<compile_context>
chip_gen: v6e
topology: v6e:2x2x1
jax: 0.10.0
libtpu: 0.0.40
codegen_flags: <defaults>
</compile_context>

<pallas_src>
import jax
import jax.numpy as jnp
from jax.experimental import pallas as pl
from jax.experimental.pallas import tpu as pltpu


_VMEM = pl.BlockSpec(memory_space=pltpu.MemorySpace.VMEM)
_VMEM_LIMIT = 32 * 1024 * 1024  # safe on v5e/v6e/v7x


# ----------------------------------------------------------------------------
# Pallas kernels
# ----------------------------------------------------------------------------
def _matmul_bias_relu_kernel(x_ref, w_ref, b_ref, o_ref):
    """o = relu(x @ w + b).  x:(tile_m,K) w:(K,N) b:(1,N).  Pure row-wise op,
    so ragged-edge M tiles (padded reads / dropped writes) are safe."""
    y = jnp.dot(x_ref[...], w_ref[...], preferred_element_type=jnp.float32)
    o_ref[...] = jnp.maximum(y + b_ref[...], 0.0)


def _conv_bn_relu_kernel(p_ref, w_ref, b_ref, g_ref, beta_ref, o_ref):
    """Fused conv2-as-matmul + BatchNorm2d(train mode) + ReLU.

    p:(M,K) rows = all (b,h,w) positions, w:(K,16).  BN statistics are taken
    over M = B*H*W per channel, exactly matching nn.BatchNorm2d's (N,H,W)
    reduction; biased variance, eps=1e-5.
    """
    y = jnp.dot(p_ref[...], w_ref[...], preferred_element_type=jnp.float32)
    y = y + b_ref[...]
    mean = jnp.mean(y, axis=0, keepdims=True)
    var = jnp.mean(jnp.square(y - mean), axis=0, keepdims=True)
    y = (y - mean) * jax.lax.rsqrt(var + 1e-5)
    o_ref[...] = jnp.maximum(y * g_ref[...] + beta_ref[...], 0.0)


def _head_kernel(p3_ref, w3_ref, b3_ref, lw1_ref, lb1_ref, lw2_ref, lb2_ref,
                 o_ref):
    """Fused classifier head.

    p3:(9, B, 144)  -- conv3 im2col patches, output-position-major.
    w3:(144,32) b3:(1,32)          conv3 weights.
    lw1:(9, 32, 128) lb1:(1,128)   Linear(288,128) with PyTorch's (c,h,w)
                                   flatten order folded in per output position.
    lw2:(128,D) lb2:(1,D)          Linear(128, encoded_space_dim).
    o:(B, D)
    """
    B = o_ref.shape[0]
    z = jnp.zeros((B, lw1_ref.shape[2]), jnp.float32) + lb1_ref[...]
    for p in range(9):  # 9 = 3x3 conv3 output positions (static unroll)
        yp = jnp.dot(p3_ref[p], w3_ref[...], preferred_element_type=jnp.float32)
        yp = jnp.maximum(yp + b3_ref[...], 0.0)           # conv3 + ReLU
        z = z + jnp.dot(yp, lw1_ref[p], preferred_element_type=jnp.float32)
    z = jnp.maximum(z, 0.0)                               # ReLU after Linear1
    o_ref[...] = (jnp.dot(z, lw2_ref[...], preferred_element_type=jnp.float32)
                  + lb2_ref[...])


# ----------------------------------------------------------------------------
# Pallas call wrappers
# ----------------------------------------------------------------------------
def matmul_bias_relu(x, w, b, tile_m=512):
    """Row-tiled fused matmul+bias+ReLU (used for conv1)."""
    M, K = x.shape
    N = w.shape[1]
    tm = M if M <= tile_m else tile_m          # full-dim block if small
    grid = (pl.cdiv(M, tm),)
    return pl.pallas_call(
        _matmul_bias_relu_kernel,
        out_shape=jax.ShapeDtypeStruct((M, N), jnp.float32),
        grid_spec=pltpu.PrefetchScalarGridSpec(
            num_scalar_prefetch=0,
            grid=grid,
            in_specs=[pl.BlockSpec((tm, K), lambda i: (i, 0)),
                      pl.BlockSpec((K, N), lambda i: (0, 0)),
                      pl.BlockSpec((1, N), lambda i: (0, 0))],
            out_specs=pl.BlockSpec((tm, N), lambda i: (i, 0)),
        ),
        compiler_params=pltpu.CompilerParams(
            dimension_semantics=("parallel",),
            vmem_limit_bytes=_VMEM_LIMIT,
        ),
    )(x, w, b)


def conv_bn_relu(p, w, b, gamma, beta):
    # TODO(synk): for very large batches, switch to an M-grid with a two-pass
    # (sum / sum-of-squares) accumulator so BN stats stay global while tiling.
    M, _ = p.shape
    N = w.shape[1]
    return pl.pallas_call(
        _conv_bn_relu_kernel,
        out_shape=jax.ShapeDtypeStruct((M, N), jnp.float32),
        in_specs=[_VMEM] * 5,
        out_specs=_VMEM,
        compiler_params=pltpu.CompilerParams(vmem_limit_bytes=_VMEM_LIMIT),
    )(p, w, b, gamma, beta)


def classifier_head(p3, w3, b3, lw1_taps, lb1, lw2, lb2):
    B = p3.shape[1]
    D = lw2.shape[1]
    return pl.pallas_call(
        _head_kernel,
        out_shape=jax.ShapeDtypeStruct((B, D), jnp.float32),
        in_specs=[_VMEM] * 7,
        out_specs=_VMEM,
        compiler_params=pltpu.CompilerParams(vmem_limit_bytes=_VMEM_LIMIT),
    )(p3, w3, b3, lw1_taps, lb1, lw2, lb2)


# ----------------------------------------------------------------------------
# XLA glue: NHWC im2col (strided slices + one concatenate, no 5-D transposes)
# ----------------------------------------------------------------------------
def im2col_nhwc(x, kh, kw, stride, pad):
    # TODO(synk): a fully in-kernel shifted-window conv would avoid the 9x
    # patch blowup; kept in XLA glue here for robust lowering at these sizes.
    if pad:
        x = jnp.pad(x, ((0, 0), (pad, pad), (pad, pad), (0, 0)))
    B, H, W, C = x.shape
    Ho = (H - kh) // stride + 1
    Wo = (W - kw) // stride + 1
    cols = []
    for i in range(kh):
        for j in range(kw):
            cols.append(x[:, i:i + stride * Ho:stride,
                          j:j + stride * Wo:stride, :])
    patches = jnp.concatenate(cols, axis=-1)   # (B, Ho, Wo, kh*kw*C), (kh,kw,c) order
    return patches, Ho, Wo


# ----------------------------------------------------------------------------
# Parameters (PyTorch layouts) and offline layout preparation
# ----------------------------------------------------------------------------
def make_params(key, encoded_space_dim):
    ks = jax.random.split(key, 10)
    scale = 0.05

    def norm(k, shape):
        return scale * jax.random.normal(k, shape, dtype=jnp.float32)

    return {
        "w1": norm(ks[0], (8, 3, 3, 3)),   "b1": norm(ks[1], (8,)),     # Conv2d(3,8,3,s2,p1)
        "w2": norm(ks[2], (16, 8, 3, 3)),  "b2": norm(ks[3], (16,)),    # Conv2d(8,16,3,s2,p1)
        "bn_gamma": jnp.ones((16,), jnp.float32),                       # BatchNorm2d(16)
        "bn_beta": jnp.zeros((16,), jnp.float32),
        "w3": norm(ks[4], (32, 16, 3, 3)), "b3": norm(ks[5], (32,)),    # Conv2d(16,32,3,s2,p0)
        "lw1": norm(ks[6], (288, 128)),    "lb1": norm(ks[7], (128,)),  # Linear(288,128), (in,out)
        "lw2": norm(ks[8], (128, encoded_space_dim)),                   # Linear(128,D)
        "lb2": norm(ks[9], (encoded_space_dim,)),
    }


def prepare_params(p):
    """Offline (zero runtime cost) layout transforms for the NHWC kernels."""
    def conv_w(w):  # (Cout,Cin,KH,KW) -> (KH*KW*Cin, Cout), rows in (kh,kw,cin) order
        co, ci, kh, kw = w.shape
        return jnp.transpose(w, (2, 3, 1, 0)).reshape(kh * kw * ci, co)

    # PyTorch flatten of (B,32,3,3) is (c,h,w)-ordered: feature f = c*9 + p.
    # Fold that permutation into lw1: lw1_taps[p, c, :] = lw1[c*9 + p, :].
    lw1_taps = jnp.transpose(p["lw1"].reshape(32, 9, 128), (1, 0, 2))  # (9,32,128)

    return {
        "w1": conv_w(p["w1"]), "b1": p["b1"].reshape(1, -1),
        "w2": conv_w(p["w2"]), "b2": p["b2"].reshape(1, -1),
        "bn_gamma": p["bn_gamma"].reshape(1, -1),
        "bn_beta": p["bn_beta"].reshape(1, -1),
        "w3": conv_w(p["w3"]), "b3": p["b3"].reshape(1, -1),
        "lw1_taps": lw1_taps, "lb1": p["lb1"].reshape(1, -1),
        "lw2": p["lw2"], "lb2": p["lb2"].reshape(1, -1),
    }


# ----------------------------------------------------------------------------
# Encoder forward (3 Pallas calls total)
# ----------------------------------------------------------------------------
def encoder_forward(prep, x_nchw):
    B = x_nchw.shape[0]
    x = jnp.transpose(x_nchw, (0, 2, 3, 1))                      # NHWC once

    # Conv2d(3->8, s2, p1) + ReLU  (row-tiled Pallas matmul)
    p1, H1, W1 = im2col_nhwc(x, 3, 3, 2, 1)                      # (B,14,14,27)
    y1 = matmul_bias_relu(p1.reshape(B * H1 * W1, 27), prep["w1"], prep["b1"])
    x1 = y1.reshape(B, H1, W1, 8)                                # NHWC, no transpose

    # Conv2d(8->16, s2, p1) + BatchNorm2d(16) + ReLU  (single fused kernel)
    p2, H2, W2 = im2col_nhwc(x1, 3, 3, 2, 1)                     # (B,7,7,72)
    y2 = conv_bn_relu(p2.reshape(B * H2 * W2, 72), prep["w2"], prep["b2"],
                      prep["bn_gamma"], prep["bn_beta"])
    x2 = y2.reshape(B, H2, W2, 16)                               # NHWC

    # Conv2d(16->32, s2, p0) + ReLU + Flatten + Linear(288,128) + ReLU
    # + Linear(128,D)  -- all fused in one kernel.
    p3, H3, W3 = im2col_nhwc(x2, 3, 3, 2, 0)                     # (B,3,3,144)
    p3 = jnp.transpose(p3.reshape(B, H3 * W3, 144), (1, 0, 2))   # (9,B,144) pos-major
    return classifier_head(p3, prep["w3"], prep["b3"], prep["lw1_taps"],
                           prep["lb1"], prep["lw2"], prep["lb2"])


if __name__ == "__main__":
    encoded_space_dim = 16
    key = jax.random.PRNGKey(0)
    k_params, k_x = jax.random.split(key)

    params = make_params(k_params, encoded_space_dim)
    prepared = prepare_params(params)

    # Input must be 28x28 (Linear expects 3*3*32 = 288 flattened features).
    x = jax.random.normal(k_x, (2, 3, 28, 28), dtype=jnp.float32)  # NCHW like PyTorch

    fwd = jax.jit(encoder_forward)
    out = fwd(prepared, x)
    out = jax.block_until_ready(out)
    assert out.shape == (2, encoded_space_dim), out.shape
    print("KERNEL_OK")
</pallas_src>

<mosaic_0001>
module attributes {stable_mosaic.version = 11 : i64} {
  func.func @_matmul_bias_relu_kernel(%arg0: i32, %arg1: memref<392x27xf32, #tpu.memory_space<vmem>>, %arg2: memref<27x8xf32, #tpu.memory_space<vmem>>, %arg3: memref<1x8xf32, #tpu.memory_space<vmem>>, %arg4: memref<392x8xf32, #tpu.memory_space<vmem>>) attributes {dimension_semantics = [#tpu.dimension_semantics<parallel>], iteration_bounds = array<i64: 1>, scalar_prefetch = 0 : i64, scratch_operands = 0 : i64, tpu.core_type = #tpu.core_type<tc>, window_params = [{transform_indices = @transform_0, window_bounds = array<i64: 392, 27>}, {pipeline_mode = #tpu.pipeline_mode<synchronous>, transform_indices = @transform_1, window_bounds = array<i64: 27, 8>}, {pipeline_mode = #tpu.pipeline_mode<synchronous>, transform_indices = @transform_2, window_bounds = array<i64: 1, 8>}, {transform_indices = @transform_3, window_bounds = array<i64: 392, 8>}]} {
    %c0 = arith.constant 0 : index
    %c0_0 = arith.constant 0 : index
    %0 = vector.load %arg1[%c0, %c0_0] : memref<392x27xf32, #tpu.memory_space<vmem>>, vector<392x27xf32>
    %c0_1 = arith.constant 0 : index
    %c0_2 = arith.constant 0 : index
    %1 = vector.load %arg2[%c0_1, %c0_2] : memref<27x8xf32, #tpu.memory_space<vmem>>, vector<27x8xf32>
    %cst = arith.constant dense<0.000000e+00> : vector<392x8xf32>
    %2 = tpu.matmul %0, %1, %cst {dimension_numbers = #tpu.dot_dimension_numbers<[1], [0], [0], [1], [0, 0, 1, 1], [], []>} : vector<392x27xf32>, vector<27x8xf32>, vector<392x8xf32> -> vector<392x8xf32>
    %c0_3 = arith.constant 0 : index
    %c0_4 = arith.constant 0 : index
    %3 = vector.load %arg3[%c0_3, %c0_4] : memref<1x8xf32, #tpu.memory_space<vmem>>, vector<1x8xf32>
    %4 = vector.broadcast %3 : vector<1x8xf32> to vector<392x8xf32>
    %5 = arith.addf %2, %4 : vector<392x8xf32>
    %cst_5 = arith.constant 0.000000e+00 : f32
    %6 = vector.broadcast %cst_5 : f32 to vector<392x8xf32>
    %7 = arith.maximumf %5, %6 : vector<392x8xf32>
    %c0_6 = arith.constant 0 : index
    %c0_7 = arith.constant 0 : index
    %8 = vector.load %arg4[%c0_6, %c0_7] : memref<392x8xf32, #tpu.memory_space<vmem>>, vector<392x8xf32>
    tpu.vector_store %arg4[%c0_6, %c0_7], %7 {strides = array<i32>} : memref<392x8xf32, #tpu.memory_space<vmem>>, vector<392x8xf32>,
    return
  }
  func.func @transform_0(%arg0: i32) -> (i32, i32) {
    %c0_i32 = arith.constant 0 : i32
    %c0_i32_0 = arith.constant 0 : i32
    return %arg0, %c0_i32 : i32, i32
  }
  func.func @transform_1(%arg0: i32) -> (i32, i32) {
    %c0_i32 = arith.constant 0 : i32
    %c0_i32_0 = arith.constant 0 : i32
    %c0_i32_1 = arith.constant 0 : i32
    return %c0_i32, %c0_i32_0 : i32, i32
  }
  func.func @transform_2(%arg0: i32) -> (i32, i32) {
    %c0_i32 = arith.constant 0 : i32
    %c0_i32_0 = arith.constant 0 : i32
    %c0_i32_1 = arith.constant 0 : i32
    return %c0_i32, %c0_i32_0 : i32, i32
  }
  func.func @transform_3(%arg0: i32) -> (i32, i32) {
    %c0_i32 = arith.constant 0 : i32
    %c0_i32_0 = arith.constant 0 : i32
    return %arg0, %c0_i32 : i32, i32
  }
}

module attributes {stable_mosaic.version = 11 : i64} {
  func.func @_conv_bn_relu_kernel(%arg0: memref<98x72xf32, #tpu.memory_space<vmem>>, %arg1: memref<72x16xf32, #tpu.memory_space<vmem>>, %arg2: memref<1x16xf32, #tpu.memory_space<vmem>>, %arg3: memref<1x16xf32, #tpu.memory_space<vmem>>, %arg4: memref<1x16xf32, #tpu.memory_space<vmem>>, %arg5: memref<98x16xf32, #tpu.memory_space<vmem>>) attributes {dimension_semantics = [], scalar_prefetch = 0 : i64, scratch_operands = 0 : i64, tpu.core_type = #tpu.core_type<tc>} {
    %c0 = arith.constant 0 : index
    %c0_0 = arith.constant 0 : index
    %0 = vector.load %arg0[%c0, %c0_0] : memref<98x72xf32, #tpu.memory_space<vmem>>, vector<98x72xf32>
    %c0_1 = arith.constant 0 : index
    %c0_2 = arith.constant 0 : index
    %1 = vector.load %arg1[%c0_1, %c0_2] : memref<72x16xf32, #tpu.memory_space<vmem>>, vector<72x16xf32>
    %cst = arith.constant dense<0.000000e+00> : vector<98x16xf32>
    %2 = tpu.matmul %0, %1, %cst {dimension_numbers = #tpu.dot_dimension_numbers<[1], [0], [0], [1], [0, 0, 1, 1], [], []>} : vector<98x72xf32>, vector<72x16xf32>, vector<98x16xf32> -> vector<98x16xf32>
    %c0_3 = arith.constant 0 : index
    %c0_4 = arith.constant 0 : index
    %3 = vector.load %arg2[%c0_3, %c0_4] : memref<1x16xf32, #tpu.memory_space<vmem>>, vector<1x16xf32>
    %4 = vector.broadcast %3 : vector<1x16xf32> to vector<98x16xf32>
    %5 = arith.addf %2, %4 : vector<98x16xf32>
    %cst_5 = arith.constant dense<0.000000e+00> : vector<16xf32>
    %6 = vector.multi_reduction <add>, %5, %cst_5 [0] : vector<98x16xf32> to vector<16xf32>
    %7 = vector.shape_cast %6 : vector<16xf32> to vector<1x16xf32>
    %cst_6 = arith.constant 9.800000e+01 : f32
    %8 = vector.broadcast %cst_6 : f32 to vector<1x16xf32>
    %9 = arith.divf %7, %8 : vector<1x16xf32>
    %10 = vector.broadcast %9 : vector<1x16xf32> to vector<98x16xf32>
    %11 = arith.subf %5, %10 : vector<98x16xf32>
    %12 = arith.mulf %11, %11 : vector<98x16xf32>
    %cst_7 = arith.constant dense<0.000000e+00> : vector<16xf32>
    %13 = vector.multi_reduction <add>, %12, %cst_7 [0] : vector<98x16xf32> to vector<16xf32>
    %14 = vector.shape_cast %13 : vector<16xf32> to vector<1x16xf32>
    %cst_8 = arith.constant 9.800000e+01 : f32
    %15 = vector.broadcast %cst_8 : f32 to vector<1x16xf32>
    %16 = arith.divf %14, %15 : vector<1x16xf32>
    %17 = vector.broadcast %9 : vector<1x16xf32> to vector<98x16xf32>
    %18 = arith.subf %5, %17 : vector<98x16xf32>
    %cst_9 = arith.constant 9.99999974E-6 : f32
    %19 = vector.broadcast %cst_9 : f32 to vector<1x16xf32>
    %20 = arith.addf %16, %19 : vector<1x16xf32>
    %21 = math.rsqrt %20 : vector<1x16xf32>
    %22 = vector.broadcast %21 : vector<1x16xf32> to vector<98x16xf32>
    %23 = arith.mulf %18, %22 : vector<98x16xf32>
    %c0_10 = arith.constant 0 : index
    %c0_11 = arith.constant 0 : index
    %24 = vector.load %arg3[%c0_10, %c0_11] : memref<1x16xf32, #tpu.memory_space<vmem>>, vector<1x16xf32>
    %25 = vector.broadcast %24 : vector<1x16xf32> to vector<98x16xf32>
    %26 = arith.mulf %23, %25 : vector<98x16xf32>
    %c0_12 = arith.constant 0 : index
    %c0_13 = arith.constant 0 : index
    %27 = vector.load %arg4[%c0_12, %c0_13] : memref<1x16xf32, #tpu.memory_space<vmem>>, vector<1x16xf32>
    %28 = vector.broadcast %27 : vector<1x16xf32> to vector<98x16xf32>
    %29 = arith.addf %26, %28 : vector<98x16xf32>
    %cst_14 = arith.constant 0.000000e+00 : f32
    %30 = vector.broadcast %cst_14 : f32 to vector<98x16xf32>
    %31 = arith.maximumf %29, %30 : vector<98x16xf32>
    %c0_15 = arith.constant 0 : index
    %c0_16 = arith.constant 0 : index
    %32 = vector.load %arg5[%c0_15, %c0_16] : memref<98x16xf32, #tpu.memory_space<vmem>>, vector<98x16xf32>
    tpu.vector_store %arg5[%c0_15, %c0_16], %31 {strides = array<i32>} : memref<98x16xf32, #tpu.memory_space<vmem>>, vector<98x16xf32>,
    return
  }
}

module attributes {stable_mosaic.version = 11 : i64} {
  func.func @_head_kernel(%arg0: memref<9x2x144xf32, #tpu.memory_space<vmem>>, %arg1: memref<144x32xf32, #tpu.memory_space<vmem>>, %arg2: memref<1x32xf32, #tpu.memory_space<vmem>>, %arg3: memref<9x32x128xf32, #tpu.memory_space<vmem>>, %arg4: memref<1x128xf32, #tpu.memory_space<vmem>>, %arg5: memref<128x16xf32, #tpu.memory_space<vmem>>, %arg6: memref<1x16xf32, #tpu.memory_space<vmem>>, %arg7: memref<2x16xf32, #tpu.memory_space<vmem>>) attributes {dimension_semantics = [], scalar_prefetch = 0 : i64, scratch_operands = 0 : i64, tpu.core_type = #tpu.core_type<tc>} {
    %cst = arith.constant 0.000000e+00 : f32
    %0 = vector.broadcast %cst : f32 to vector<2x128xf32>
    %c0 = arith.constant 0 : index
    %c0_0 = arith.constant 0 : index
    %1 = vector.load %arg4[%c0, %c0_0] : memref<1x128xf32, #tpu.memory_space<vmem>>, vector<1x128xf32>
    %2 = vector.broadcast %1 : vector<1x128xf32> to vector<2x128xf32>
    %3 = arith.addf %0, %2 : vector<2x128xf32>
    %c0_1 = arith.constant 0 : index
    %c0_2 = arith.constant 0 : index
    %c0_3 = arith.constant 0 : index
    %4 = vector.load %arg0[%c0_1, %c0_2, %c0_3] : memref<9x2x144xf32, #tpu.memory_space<vmem>>, vector<1x2x144xf32>
    %5 = vector.shape_cast %4 : vector<1x2x144xf32> to vector<2x144xf32>
    %c0_4 = arith.constant 0 : index
    %c0_5 = arith.constant 0 : index
    %6 = vector.load %arg1[%c0_4, %c0_5] : memref<144x32xf32, #tpu.memory_space<vmem>>, vector<144x32xf32>
    %cst_6 = arith.constant dense<0.000000e+00> : vector<2x32xf32>
    %7 = tpu.matmul %5, %6, %cst_6 {dimension_numbers = #tpu.dot_dimension_numbers<[1], [0], [0], [1], [0, 0, 1, 1], [], []>} : vector<2x144xf32>, vector<144x32xf32>, vector<2x32xf32> -> vector<2x32xf32>
    %c0_7 = arith.constant 0 : index
    %c0_8 = arith.constant 0 : index
    %8 = vector.load %arg2[%c0_7, %c0_8] : memref<1x32xf32, #tpu.memory_space<vmem>>, vector<1x32xf32>
    %9 = vector.broadcast %8 : vector<1x32xf32> to vector<2x32xf32>
    %10 = arith.addf %7, %9 : vector<2x32xf32>
    %cst_9 = arith.constant 0.000000e+00 : f32
    %11 = vector.broadcast %cst_9 : f32 to vector<2x32xf32>
    %12 = arith.maximumf %10, %11 : vector<2x32xf32>
    %c0_10 = arith.constant 0 : index
    %c0_11 = arith.constant 0 : index
    %c0_12 = arith.constant 0 : index
    %13 = vector.load %arg3[%c0_10, %c0_11, %c0_12] : memref<9x32x128xf32, #tpu.memory_space<vmem>>, vector<1x32x128xf32>
    %14 = vector.shape_cast %13 : vector<1x32x128xf32> to vector<32x128xf32>
    %cst_13 = arith.constant dense<0.000000e+00> : vector<2x128xf32>
    %15 = tpu.matmul %12, %14, %cst_13 {dimension_numbers = #tpu.dot_dimension_numbers<[1], [0], [0], [1], [0, 0, 1, 1], [], []>} : vector<2x32xf32>, vector<32x128xf32>, vector<2x128xf32> -> vector<2x128xf32>
    %16 = arith.addf %3, %15 : vector<2x128xf32>
    %c1 = arith.constant 1 : index
    %c0_14 = arith.constant 0 : index
    %c0_15 = arith.constant 0 : index
    %17 = vector.load %arg0[%c1, %c0_14, %c0_15] : memref<9x2x144xf32, #tpu.memory_space<vmem>>, vector<1x2x144xf32>
    %18 = vector.shape_cast %17 : vector<1x2x144xf32> to vector<2x144xf32>
    %c0_16 = arith.constant 0 : index
    %c0_17 = arith.constant 0 : index
    %19 = vector.load %arg1[%c0_16, %c0_17] : memref<144x32xf32, #tpu.memory_space<vmem>>, vector<144x32xf32>
    %cst_18 = arith.constant dense<0.000000e+00> : vector<2x32xf32>
    %20 = tpu.matmul %18, %19, %cst_18 {dimension_numbers = #tpu.dot_dimension_numbers<[1], [0], [0], [1], [0, 0, 1, 1], [], []>} : vector<2x144xf32>, vector<144x32xf32>, vector<2x32xf32> -> vector<2x32xf32>
    %c0_19 = arith.constant 0 : index
    %c0_20 = arith.constant 0 : index
    %21 = vector.load %arg2[%c0_19, %c0_20] : memref<1x32xf32, #tpu.memory_space<vmem>>, vector<1x32xf32>
    %22 = vector.broadcast %21 : vector<1x32xf32> to vector<2x32xf32>
    %23 = arith.addf %20, %22 : vector<2x32xf32>
    %cst_21 = arith.constant 0.000000e+00 : f32
    %24 = vector.broadcast %cst_21 : f32 to vector<2x32xf32>
    %25 = arith.maximumf %23, %24 : vector<2x32xf32>
    %c1_22 = arith.constant 1 : index
    %c0_23 = arith.constant 0 : index
    %c0_24 = arith.constant 0 : index
    %26 = vector.load %arg3[%c1_22, %c0_23, %c0_24] : memref<9x32x128xf32, #tpu.memory_space<vmem>>, vector<1x32x128xf32>
    %27 = vector.shape_cast %26 : vector<1x32x128xf32> to vector<32x128xf32>
    %cst_25 = arith.constant dense<0.000000e+00> : vector<2x128xf32>
    %28 = tpu.matmul %25, %27, %cst_25 {dimension_numbers = #tpu.dot_dimension_numbers<[1], [0], [0], [1], [0, 0, 1, 1], [], []>} : vector<2x32xf32>, vector<32x128xf32>, vector<2x128xf32> -> vector<2x128xf32>
    %29 = arith.addf %16, %28 : vector<2x128xf32>
    %c2 = arith.constant 2 : index
    %c0_26 = arith.constant 0 : index
    %c0_27 = arith.constant 0 : index
    %30 = vector.load %arg0[%c2, %c0_26, %c0_27] : memref<9x2x144xf32, #tpu.memory_space<vmem>>, vector<1x2x144xf32>
    %31 = vector.shape_cast %30 : vector<1x2x144xf32> to vector<2x144xf32>
    %c0_28 = arith.constant 0 : index
    %c0_29 = arith.constant 0 : index
    %32 = vector.load %arg1[%c0_28, %c0_29] : memref<144x32xf32, #tpu.memory_space<vmem>>, vector<144x32xf32>
    %cst_30 = arith.constant dense<0.000000e+00> : vector<2x32xf32>
    %33 = tpu.matmul %31, %32, %cst_30 {dimension_numbers = #tpu.dot_dimension_numbers<[1], [0], [0], [1], [0, 0, 1, 1], [], []>} : vector<2x144xf32>, vector<144x32xf32>, vector<2x32xf32> -> vector<2x32xf32>
    %c0_31 = arith.constant 0 : index
    %c0_32 = arith.constant 0 : index
    %34 = vector.load %arg2[%c0_31, %c0_32] : memref<1x32xf32, #tpu.memory_space<vmem>>, vector<1x32xf32>
    %35 = vector.broadcast %34 : vector<1x32xf32> to vector<2x32xf32>
    %36 = arith.addf %33, %35 : vector<2x32xf32>
    %cst_33 = arith.constant 0.000000e+00 : f32
    %37 = vector.broadcast %cst_33 : f32 to vector<2x32xf32>
    %38 = arith.maximumf %36, %37 : vector<2x32xf32>
    %c2_34 = arith.constant 2 : index
    %c0_35 = arith.constant 0 : index
    %c0_36 = arith.constant 0 : index
    %39 = vector.load %arg3[%c2_34, %c0_35, %c0_36] : memref<9x32x128xf32, #tpu.memory_space<vmem>>, vector<1x32x128xf32>
    %40 = vector.shape_cast %39 : vector<1x32x128xf32> to vector<32x128xf32>
    %cst_37 = arith.constant dense<0.000000e+00> : vector<2x128xf32>
    %41 = tpu.matmul %38, %40, %cst_37 {dimension_numbers = #tpu.dot_dimension_numbers<[1], [0], [0], [1], [0, 0, 1, 1], [], []>} : vector<2x32xf32>, vector<32x128xf32>, vector<2x128xf32> -> vector<2x128xf32>
    %42 = arith.addf %29, %41 : vector<2x128xf32>
    %c3 = arith.constant 3 : index
    %c0_38 = arith.constant 0 : index
    %c0_39 = arith.constant 0 : index
    %43 = vector.load %arg0[%c3, %c0_38, %c0_39] : memref<9x2x144xf32, #tpu.memory_space<vmem>>, vector<1x2x144xf32>
    %44 = vector.shape_cast %43 : vector<1x2x144xf32> to vector<2x144xf32>
    %c0_40 = arith.constant 0 : index
    %c0_41 = arith.constant 0 : index
    %45 = vector.load %arg1[%c0_40, %c0_41] : memref<144x32xf32, #tpu.memory_space<vmem>>, vector<144x32xf32>
    %cst_42 = arith.constant dense<0.000000e+00> : vector<2x32xf32>
    %46 = tpu.matmul %44, %45, %cst_42 {dimension_numbers = #tpu.dot_dimension_numbers<[1], [0], [0], [1], [0, 0, 1, 1], [], []>} : vector<2x144xf32>, vector<144x32xf32>, vector<2x32xf32> -> vector<2x32xf32>
    %c0_43 = arith.constant 0 : index
    %c0_44 = arith.constant 0 : index
    %47 = vector.load %arg2[%c0_43, %c0_44] : memref<1x32xf32, #tpu.memory_space<vmem>>, vector<1x32xf32>
    %48 = vector.broadcast %47 : vector<1x32xf32> to vector<2x32xf32>
    %49 = arith.addf %46, %48 : vector<2x32xf32>
    %cst_45 = arith.constant 0.000000e+00 : f32
    %50 = vector.broadcast %cst_45 : f32 to vector<2x32xf32>
    %51 = arith.maximumf %49, %50 : vector<2x32xf32>
    %c3_46 = arith.constant 3 : index
    %c0_47 = arith.constant 0 : index
    %c0_48 = arith.constant 0 : index
    %52 = vector.load %arg3[%c3_46, %c0_47, %c0_48] : memref<9x32x128xf32, #tpu.memory_space<vmem>>, vector<1x32x128xf32>
    %53 = vector.shape_cast %52 : vector<1x32x128xf32> to vector<32x128xf32>
    %cst_49 = arith.constant dense<0.000000e+00> : vector<2x128xf32>
    %54 = tpu.matmul %51, %53, %cst_49 {dimension_numbers = #tpu.dot_dimension_numbers<[1], [0], [0], [1], [0, 0, 1, 1], [], []>} : vector<2x32xf32>, vector<32x128xf32>, vector<2x128xf32> -> vector<2x128xf32>
    %55 = arith.addf %42, %54 : vector<2x128xf32>
    %c4 = arith.constant 4 : index
    %c0_50 = arith.constant 0 : index
    %c0_51 = arith.constant 0 : index
    %56 = vector.load %arg0[%c4, %c0_50, %c0_51] : memref<9x2x144xf32, #tpu.memory_space<vmem>>, vector<1x2x144xf32>
    %57 = vector.shape_cast %56 : vector<1x2x144xf32> to vector<2x144xf32>
    %c0_52 = arith.constant 0 : index
    %c0_53 = arith.constant 0 : index
    %58 = vector.load %arg1[%c0_52, %c0_53] : memref<144x32xf32, #tpu.memory_space<vmem>>, vector<144x32xf32>
    %cst_54 = arith.constant dense<0.000000e+00> : vector<2x32xf32>
    %59 = tpu.matmul %57, %58, %cst_54 {dimension_numbers = #tpu.dot_dimension_numbers<[1], [0], [0], [1], [0, 0, 1, 1], [], []>} : vector<2x144xf32>, vector<144x32xf32>, vector<2x32xf32> -> vector<2x32xf32>
    %c0_55 = arith.constant 0 : index
    %c0_56 = arith.constant 0 : index
    %60 = vector.load %arg2[%c0_55, %c0_56] : memref<1x32xf32, #tpu.memory_space<vmem>>, vector<1x32xf32>
    %61 = vector.broadcast %60 : vector<1x32xf32> to vector<2x32xf32>
    %62 = arith.addf %59, %61 : vector<2x32xf32>
    %cst_57 = arith.constant 0.000000e+00 : f32
    %63 = vector.broadcast %cst_57 : f32 to vector<2x32xf32>
    %64 = arith.maximumf %62, %63 : vector<2x32xf32>
    %c4_58 = arith.constant 4 : index
    %c0_59 = arith.constant 0 : index
    %c0_60 = arith.constant 0 : index
    %65 = vector.load %arg3[%c4_58, %c0_59, %c0_60] : memref<9x32x128xf32, #tpu.memory_space<vmem>>, vector<1x32x128xf32>
    %66 = vector.shape_cast %65 : vector<1x32x128xf32> to vector<32x128xf32>
    %cst_61 = arith.constant dense<0.000000e+00> : vector<2x128xf32>
    %67 = tpu.matmul %64, %66, %cst_61 {dimension_numbers = #tpu.dot_dimension_numbers<[1], [0], [0], [1], [0, 0, 1, 1], [], []>} : vector<2x32xf32>, vector<32x128xf32>, vector<2x128xf32> -> vector<2x128xf32>
    %68 = arith.addf %55, %67 : vector<2x128xf32>
    %c5 = arith.constant 5 : index
    %c0_62 = arith.constant 0 : index
    %c0_63 = arith.constant 0 : index
    %69 = vector.load %arg0[%c5, %c0_62, %c0_63] : memref<9x2x144xf32, #tpu.memory_space<vmem>>, vector<1x2x144xf32>
    %70 = vector.shape_cast %69 : vector<1x2x144xf32> to vector<2x144xf32>
    %c0_64 = arith.constant 0 : index
    %c0_65 = arith.constant 0 : index
    %71 = vector.load %arg1[%c0_64, %c0_65] : memref<144x32xf32, #tpu.memory_space<vmem>>, vector<144x32xf32>
    %cst_66 = arith.constant dense<0.000000e+00> : vector<2x32xf32>
    %72 = tpu.matmul %70, %71, %cst_66 {dimension_numbers = #tpu.dot_dimension_numbers<[1], [0], [0], [1], [0, 0, 1, 1], [], []>} : vector<2x144xf32>, vector<144x32xf32>, vector<2x32xf32> -> vector<2x32xf32>
    %c0_67 = arith.constant 0 : index
    %c0_68 = arith.constant 0 : index
    %73 = vector.load %arg2[%c0_67, %c0_68] : memref<1x32xf32, #tpu.memory_space<vmem>>, vector<1x32xf32>
    %74 = vector.broadcast %73 : vector<1x32xf32> to vector<2x32xf32>
    %75 = arith.addf %72, %74 : vector<2x32xf32>
    %cst_69 = arith.constant 0.000000e+00 : f32
    %76 = vector.broadcast %cst_69 : f32 to vector<2x32xf32>
    %77 = arith.maximumf %75, %76 : vector<2x32xf32>
    %c5_70 = arith.constant 5 : index
    %c0_71 = arith.constant 0 : index
    %c0_72 = arith.constant 0 : index
    %78 = vector.load %arg3[%c5_70, %c0_71, %c0_72] : memref<9x32x128xf32, #tpu.memory_space<vmem>>, vector<1x32x128xf32>
    %79 = vector.shape_cast %78 : vector<1x32x128xf32> to vector<32x128xf32>
    %cst_73 = arith.constant dense<0.000000e+00> : vector<2x128xf32>
    %80 = tpu.matmul %77, %79, %cst_73 {dimension_numbers = #tpu.dot_dimension_numbers<[1], [0], [0], [1], [0, 0, 1, 1], [], []>} : vector<2x32xf32>, vector<32x128xf32>, vector<2x128xf32> -> vector<2x128xf32>
    %81 = arith.addf %68, %80 : vector<2x128xf32>
    %c6 = arith.constant 6 : index
    %c0_74 = arith.constant 0 : index
    %c0_75 = arith.constant 0 : index
    %82 = vector.load %arg0[%c6, %c0_74, %c0_75] : memref<9x2x144xf32, #tpu.memory_space<vmem>>, vector<1x2x144xf32>
    %83 = vector.shape_cast %82 : vector<1x2x144xf32> to vector<2x144xf32>
    %c0_76 = arith.constant 0 : index
    %c0_77 = arith.constant 0 : index
    %84 = vector.load %arg1[%c0_76, %c0_77] : memref<144x32xf32, #tpu.memory_space<vmem>>, vector<144x32xf32>
    %cst_78 = arith.constant dense<0.000000e+00> : vector<2x32xf32>
    %85 = tpu.matmul %83, %84, %cst_78 {dimension_numbers = #tpu.dot_dimension_numbers<[1], [0], [0], [1], [0, 0, 1, 1], [], []>} : vector<2x144xf32>, vector<144x32xf32>, vector<2x32xf32> -> vector<2x32xf32>
    %c0_79 = arith.constant 0 : index
    %c0_80 = arith.constant 0 : index
    %86 = vector.load %arg2[%c0_79, %c0_80] : memref<1x32xf32, #tpu.memory_space<vmem>>, vector<1x32xf32>
    %87 = vector.broadcast %86 : vector<1x32xf32> to vector<2x32xf32>
    %88 = arith.addf %85, %87 : vector<2x32xf32>
    %cst_81 = arith.constant 0.000000e+00 : f32
    %89 = vector.broadcast %cst_81 : f32 to vector<2x32xf32>
    %90 = arith.maximumf %88, %89 : vector<2x32xf32>
    %c6_82 = arith.constant 6 : index
    %c0_83 = arith.constant 0 : index
    %c0_84 = arith.constant 0 : index
    %91 = vector.load %arg3[%c6_82, %c0_83, %c0_84] : memref<9x32x128xf32, #tpu.memory_space<vmem>>, vector<1x32x128xf32>
    %92 = vector.shape_cast %91 : vector<1x32x128xf32> to vector<32x128xf32>
    %cst_85 = arith.constant dense<0.000000e+00> : vector<2x128xf32>
    %93 = tpu.matmul %90, %92, %cst_85 {dimension_numbers = #tpu.dot_dimension_numbers<[1], [0], [0], [1], [0, 0, 1, 1], [], []>} : vector<2x32xf32>, vector<32x128xf32>, vector<2x128xf32> -> vector<2x128xf32>
    %94 = arith.addf %81, %93 : vector<2x128xf32>
    %c7 = arith.constant 7 : index
    %c0_86 = arith.constant 0 : index
    %c0_87 = arith.constant 0 : index
    %95 = vector.load %arg0[%c7, %c0_86, %c0_87] : memref<9x2x144xf32, #tpu.memory_space<vmem>>, vector<1x2x144xf32>
    %96 = vector.shape_cast %95 : vector<1x2x144xf32> to vector<2x144xf32>
    %c0_88 = arith.constant 0 : index
    %c0_89 = arith.constant 0 : index
    %97 = vector.load %arg1[%c0_88, %c0_89] : memref<144x32xf32, #tpu.memory_space<vmem>>, vector<144x32xf32>
    %cst_90 = arith.constant dense<0.000000e+00> : vector<2x32xf32>
    %98 = tpu.matmul %96, %97, %cst_90 {dimension_numbers = #tpu.dot_dimension_numbers<[1], [0], [0], [1], [0, 0, 1, 1], [], []>} : vector<2x144xf32>, vector<144x32xf32>, vector<2x32xf32> -> vector<2x32xf32>
    %c0_91 = arith.constant 0 : index
    %c0_92 = arith.constant 0 : index
    %99 = vector.load %arg2[%c0_91, %c0_92] : memref<1x32xf32, #tpu.memory_space<vmem>>, vector<1x32xf32>
    %100 = vector.broadcast %99 : vector<1x32xf32> to vector<2x32xf32>
    %101 = arith.addf %98, %100 : vector<2x32xf32>
    %cst_93 = arith.constant 0.000000e+00 : f32
    %102 = vector.broadcast %cst_93 : f32 to vector<2x32xf32>
    %103 = arith.maximumf %101, %102 : vector<2x32xf32>
    %c7_94 = arith.constant 7 : index
    %c0_95 = arith.constant 0 : index
    %c0_96 = arith.constant 0 : index
    %104 = vector.load %arg3[%c7_94, %c0_95, %c0_96] : memref<9x32x128xf32, #tpu.memory_space<vmem>>, vector<1x32x128xf32>
    %105 = vector.shape_cast %104 : vector<1x32x128xf32> to vector<32x128xf32>
    %cst_97 = arith.constant dense<0.000000e+00> : vector<2x128xf32>
    %106 = tpu.matmul %103, %105, %cst_97 {dimension_numbers = #tpu.dot_dimension_numbers<[1], [0], [0], [1], [0, 0, 1, 1], [], []>} : vector<2x32xf32>, vector<32x128xf32>, vector<2x128xf32> -> vector<2x128xf32>
    %107 = arith.addf %94, %106 : vector<2x128xf32>
    %c8 = arith.constant 8 : index
    %c0_98 = arith.constant 0 : index
    %c0_99 = arith.constant 0 : index
    %108 = vector.load %arg0[%c8, %c0_98, %c0_99] : memref<9x2x144xf32, #tpu.memory_space<vmem>>, vector<1x2x144xf32>
    %109 = vector.shape_cast %108 : vector<1x2x144xf32> to vector<2x144xf32>
    %c0_100 = arith.constant 0 : index
    %c0_101 = arith.constant 0 : index
    %110 = vector.load %arg1[%c0_100, %c0_101] : memref<144x32xf32, #tpu.memory_space<vmem>>, vector<144x32xf32>
    %cst_102 = arith.constant dense<0.000000e+00> : vector<2x32xf32>
    %111 = tpu.matmul %109, %110, %cst_102 {dimension_numbers = #tpu.dot_dimension_numbers<[1], [0], [0], [1], [0, 0, 1, 1], [], []>} : vector<2x144xf32>, vector<144x32xf32>, vector<2x32xf32> -> vector<2x32xf32>
    %c0_103 = arith.constant 0 : index
    %c0_104 = arith.constant 0 : index
    %112 = vector.load %arg2[%c0_103, %c0_104] : memref<1x32xf32, #tpu.memory_space<vmem>>, vector<1x32xf32>
    %113 = vector.broadcast %112 : vector<1x32xf32> to vector<2x32xf32>
    %114 = arith.addf %111, %113 : vector<2x32xf32>
    %cst_105 = arith.constant 0.000000e+00 : f32
    %115 = vector.broadcast %cst_105 : f32 to vector<2x32xf32>
    %116 = arith.maximumf %114, %115 : vector<2x32xf32>
    %c8_106 = arith.constant 8 : index
    %c0_107 = arith.constant 0 : index
    %c0_108 = arith.constant 0 : index
    %117 = vector.load %arg3[%c8_106, %c0_107, %c0_108] : memref<9x32x128xf32, #tpu.memory_space<vmem>>, vector<1x32x128xf32>
    %118 = vector.shape_cast %117 : vector<1x32x128xf32> to vector<32x128xf32>
    %cst_109 = arith.constant dense<0.000000e+00> : vector<2x128xf32>
    %119 = tpu.matmul %116, %118, %cst_109 {dimension_numbers = #tpu.dot_dimension_numbers<[1], [0], [0], [1], [0, 0, 1, 1], [], []>} : vector<2x32xf32>, vector<32x128xf32>, vector<2x128xf32> -> vector<2x128xf32>
    %120 = arith.addf %107, %119 : vector<2x128xf32>
    %cst_110 = arith.constant 0.000000e+00 : f32
    %121 = vector.broadcast %cst_110 : f32 to vector<2x128xf32>
    %122 = arith.maximumf %120, %121 : vector<2x128xf32>
    %c0_111 = arith.constant 0 : index
    %c0_112 = arith.constant 0 : index
    %123 = vector.load %arg5[%c0_111, %c0_112] : memref<128x16xf32, #tpu.memory_space<vmem>>, vector<128x16xf32>
    %cst_113 = arith.constant dense<0.000000e+00> : vector<2x16xf32>
    %124 = tpu.matmul %122, %123, %cst_113 {dimension_numbers = #tpu.dot_dimension_numbers<[1], [0], [0], [1], [0, 0, 1, 1], [], []>} : vector<2x128xf32>, vector<128x16xf32>, vector<2x16xf32> -> vector<2x16xf32>
    %c0_114 = arith.constant 0 : index
    %c0_115 = arith.constant 0 : index
    %125 = vector.load %arg6[%c0_114, %c0_115] : memref<1x16xf32, #tpu.memory_space<vmem>>, vector<1x16xf32>
    %126 = vector.broadcast %125 : vector<1x16xf32> to vector<2x16xf32>
    %127 = arith.addf %124, %126 : vector<2x16xf32>
    %c0_116 = arith.constant 0 : index
    %c0_117 = arith.constant 0 : index
    %128 = vector.load %arg7[%c0_116, %c0_117] : memref<2x16xf32, #tpu.memory_space<vmem>>, vector<2x16xf32>
    tpu.vector_store %arg7[%c0_116, %c0_117], %127 {strides = array<i32>} : memref<2x16xf32, #tpu.memory_space<vmem>>, vector<2x16xf32>,
    return
  }
}

</mosaic_0001>

<bundles_post_ra>
// kernel: encoder_forward.3
= control target key start
LH: loop header
LB: loop body
LE: loop exit
PB: predicated region body
PF: predicated region fallthrough
CT: control target
= control target key end

     0   :  { %vm222_vm0 = vcmask 1042432   ;;  %v908_v0 = vmov 0.0   ;;  %vm74_vm1 = vcmask 220160   ;;  %vm909_vm2 = vmmov 0   ;;  %s1494_s1 = inlined_call_operand.vmem [shape: f32[27,8], index: 1, kind: input, shape index: {}]   ;;  %s1495_s0 = inlined_call_operand.vmem [shape: f32[392,27], index: 0, kind: input, shape index: {}]   ;;  %s1496_s2 = inlined_call_operand.vmem [shape: f32[1,8], index: 2, kind: input, shape index: {}]   ;;  %s1497_s3 = inlined_call_operand.vmem [shape: f32[392,8], index: 3, kind: output, shape index: {}]  }
   0x1   :  { %743 = vmatprep.subr.mxu0 %v908_v0  ;;  %v66_v1 = vld [vmem:[%s1494_s1 + $0x18] sm:$0x7]  ;;  %898 = vmatprep.subr.mxu1 %v908_v0  ;;  %v65_v2 = vld [vmem:[%s1494_s1 + $0x10] sm:$0xff]  ;;  %v64_v3 = vld [vmem:[%s1494_s1 + $0x8] sm:$0xff]  ;;  %vm585_vm3 = vcmask 64512  }
   0x2   :  { %744 = vmatpush3.msk.msra.mxu0 %vm222_vm0, %v66_v1  ;;  %902 = vmatpush3.msk.msra.mxu1 %vm222_vm0, %v66_v1  ;;  %v63_v4 = vld [vmem:[%s1494_s1] sm:$0xff]  ;;  %v39_v6 = vld [vmem:[%s1495_s0 + $0xc8] sm:$0xff]  ;;  %v40_v8 = vld [vmem:[%s1495_s0 + $0xd0] sm:$0xff] }
   0x3   :  { %745 = vmatprep.subr.mxu0 %v908_v0  ;;  %899 = vmatprep.subr.mxu1 %v908_v0  ;;  %v14_v5 = vld [vmem:[%s1495_s0] sm:$0xff]  ;;  %v15_v7 = vld [vmem:[%s1495_s0 + $0x8] sm:$0xff]  ;;  %v16_v9 = vld [vmem:[%s1495_s0 + $0x10] sm:$0xff] }
   0x4   :  { %746 = vmatpush3.msra.mxu0 %v65_v2  ;;  %903 = vmatpush3.msra.mxu1 %v65_v2  ;;  %v41_v10 = vld [vmem:[%s1495_s0 + $0xd8] sm:$0xff]  ;;  %v42_v12 = vld [vmem:[%s1495_s0 + $0xe0] sm:$0xff]  ;;  %v43_v14 = vld [vmem:[%s1495_s0 + $0xe8] sm:$0xff] }
   0x5   :  { %747 = vmatprep.subr.mxu0 %v908_v0  ;;  %900 = vmatprep.subr.mxu1 %v908_v0  ;;  %v17_v11 = vld [vmem:[%s1495_s0 + $0x18] sm:$0xff]  ;;  %v18_v13 = vld [vmem:[%s1495_s0 + $0x20] sm:$0xff]  ;;  %v19_v15 = vld [vmem:[%s1495_s0 + $0x28] sm:$0xff] }
   0x6   :  { %748 = vmatpush3.msra.mxu0 %v64_v3  ;;  %904 = vmatpush3.msra.mxu1 %v64_v3  ;;  %v44_v16 = vld [vmem:[%s1495_s0 + $0xf0] sm:$0xff]  ;;  %v45_v18 = vld [vmem:[%s1495_s0 + $0xf8] sm:$0xff]  ;;  %v46_v20 = vld [vmem:[%s1495_s0 + $0x100] sm:$0xff] }
   0x7   :  { %749 = vmatprep.subr.mxu0 %v908_v0  ;;  %751 = vmatprep.mubr.msk.f32.mxu0 %vm909_vm2, %v908_v0  ;;  %v20_v17 = vld [vmem:[%s1495_s0 + $0x30] sm:$0xff]  ;;  %v21_v19 = vld [vmem:[%s1495_s0 + $0x38] sm:$0xff]  ;;  %v22_v21 = vld [vmem:[%s1495_s0 + $0x40] sm:$0xff] }
   0x8   :  { %750 = vmatpush3.msra.mxu0 %v63_v4  ;;  %901 = vmatprep.subr.mxu1 %v908_v0  ;;  %v47_v22 = vld [vmem:[%s1495_s0 + $0x108] sm:$0xff]  ;;  %v48_v24 = vld [vmem:[%s1495_s0 + $0x110] sm:$0xff]  ;;  %v49_v26 = vld [vmem:[%s1495_s0 + $0x118] sm:$0xff] }
   0x9   :  { %752 = vmatmul.mubr.msk.f32.vlgmr.msra.gmra.mxu0 %vm74_vm1, %v14_v5  ;;  %905 = vmatpush3.msra.mxu1 %v63_v4  ;;  %v23_v23 = vld [vmem:[%s1495_s0 + $0x48] sm:$0xff]  ;;  %v24_v25 = vld [vmem:[%s1495_s0 + $0x50] sm:$0xff]  ;;  %v25_v27 = vld [vmem:[%s1495_s0 + $0x58] sm:$0xff] }
   0xa   :  { %826 = vmatprep.mubr.msk.f32.mxu1 %vm909_vm2, %v908_v0  ;;  %754 = vmatprep.mubr.msk.f32.mxu0 %vm909_vm2, %v908_v0  ;;  %v50_v28 = vld [vmem:[%s1495_s0 + $0x120] sm:$0xff]  ;;  %v51_v30 = vld [vmem:[%s1495_s0 + $0x128] sm:$0xff]  ;;  %v52_v32 = vld [vmem:[%s1495_s0 + $0x130] sm:$0xff] }
   0xb   :  { %827 = vmatmul.mubr.msk.f32.vlgmr.msra.gmra.mxu1 %vm74_vm1, %v39_v6  ;;  %v26_v29 = vld [vmem:[%s1495_s0 + $0x60] sm:$0xff]  ;;  %v27_v31 = vld [vmem:[%s1495_s0 + $0x68] sm:$0xff]  ;;  %v28_v33 = vld [vmem:[%s1495_s0 + $0x70] sm:$0xff] }
   0xc   :  { %829 = vmatprep.mubr.msk.f32.mxu1 %vm909_vm2, %v908_v0  ;;  %v53_v34 = vld [vmem:[%s1495_s0 + $0x138] sm:$0xff]  ;;  %v54_v36 = vld [vmem:[%s1495_s0 + $0x140] sm:$0xff]  ;;  %v55_v38 = vld [vmem:[%s1495_s0 + $0x148] sm:$0xff] }
   0xd   :  { %755 = vmatmul.mubr.msk.f32.gmra.mxu0 %vm74_vm1, %v15_v7  ;;  %v29_v35 = vld [vmem:[%s1495_s0 + $0x78] sm:$0xff]  ;;  %v30_v37 = vld [vmem:[%s1495_s0 + $0x80] sm:$0xff]  ;;  %v31_v39 = vld [vmem:[%s1495_s0 + $0x88] sm:$0xff] }
   0xe   :  { %757 = vmatprep.mubr.msk.f32.mxu0 %vm909_vm2, %v908_v0  ;;  %v56_v40 = vld [vmem:[%s1495_s0 + $0x150] sm:$0xff]  ;;  %v57_v42 = vld [vmem:[%s1495_s0 + $0x158] sm:$0xff]  ;;  %v58_v44 = vld [vmem:[%s1495_s0 + $0x160] sm:$0xff] }
   0xf   :  { %830 = vmatmul.mubr.msk.f32.gmra.mxu1 %vm74_vm1, %v40_v8  ;;  %v32_v41 = vld [vmem:[%s1495_s0 + $0x90] sm:$0xff]  ;;  %v33_v43 = vld [vmem:[%s1495_s0 + $0x98] sm:$0xff]  ;;  %v34_v45 = vld [vmem:[%s1495_s0 + $0xa0] sm:$0xff] }
  0x10   :  { %832 = vmatprep.mubr.msk.f32.mxu1 %vm909_vm2, %v908_v0  ;;  %v59_v46 = vld [vmem:[%s1495_s0 + $0x168] sm:$0xff]  ;;  %v60_v48 = vld [vmem:[%s1495_s0 + $0x170] sm:$0xff]  ;;  %v61_v50 = vld [vmem:[%s1495_s0 + $0x178] sm:$0xff] }
  0x11   :  { %758 = vmatmul.mubr.msk.f32.gmra.mxu0 %vm74_vm1, %v16_v9  ;;  %v35_v47 = vld [vmem:[%s1495_s0 + $0xa8] sm:$0xff]  ;;  %v36_v49 = vld [vmem:[%s1495_s0 + $0xb0] sm:$0xff]  ;;  %v37_v51 = vld [vmem:[%s1495_s0 + $0xb8] sm:$0xff] }
  0x12   :  { %760 = vmatprep.mubr.msk.f32.mxu0 %vm909_vm2, %v908_v0  ;;  %v62_v52 = vld [vmem:[%s1495_s0 + $0x180] sm:$0xff] }
  0x13   :  { %833 = vmatmul.mubr.msk.f32.gmra.mxu1 %vm74_vm1, %v41_v10  ;;  %v38_v53 = vld [vmem:[%s1495_s0 + $0xc0] sm:$0xff] }
  0x14   :  { %835 = vmatprep.mubr.msk.f32.mxu1 %vm909_vm2, %v908_v0  ;;  %v1247_v54 = vld [vmem:[%s1496_s2] ss:$0 sm:$0xff] }
  0x15   :  { %761 = vmatmul.mubr.msk.f32.gmra.mxu0 %vm74_vm1, %v17_v11 }
  0x16   :  { %763 = vmatprep.mubr.msk.f32.mxu0 %vm909_vm2, %v908_v0 }
  0x17   :  { %836 = vmatmul.mubr.msk.f32.gmra.mxu1 %vm74_vm1, %v42_v12 }
  0x18   :  { %838 = vmatprep.mubr.msk.f32.mxu1 %vm909_vm2, %v908_v0 }
  0x19   :  { %764 = vmatmul.mubr.msk.f32.gmra.mxu0 %vm74_vm1, %v18_v13 }
  0x1a   :  { %766 = vmatprep.mubr.msk.f32.mxu0 %vm909_vm2, %v908_v0 }
  0x1b   :  { %839 = vmatmul.mubr.msk.f32.gmra.mxu1 %vm74_vm1, %v43_v14 }
  0x1c   :  { %841 = vmatprep.mubr.msk.f32.mxu1 %vm909_vm2, %v908_v0 }
  0x1d   :  { %767 = vmatmul.mubr.msk.f32.gmra.mxu0 %vm74_vm1, %v19_v15 }
  0x1e   :  { %769 = vmatprep.mubr.msk.f32.mxu0 %vm909_vm2, %v908_v0 }
  0x1f   :  { %842 = vmatmul.mubr.msk.f32.gmra.mxu1 %vm74_vm1, %v44_v16 }
  0x20   :  { %844 = vmatprep.mubr.msk.f32.mxu1 %vm909_vm2, %v908_v0 }
  0x21   :  { %770 = vmatmul.mubr.msk.f32.gmra.mxu0 %vm74_vm1, %v20_v17 }
  0x22   :  { %772 = vmatprep.mubr.msk.f32.mxu0 %vm909_vm2, %v908_v0 }
  0x23   :  { %845 = vmatmul.mubr.msk.f32.gmra.mxu1 %vm74_vm1, %v45_v18 }
  0x24   :  { %847 = vmatprep.mubr.msk.f32.mxu1 %vm909_vm2, %v908_v0 }
  0x25   :  { %773 = vmatmul.mubr.msk.f32.gmra.mxu0 %vm74_vm1, %v21_v19 }
  0x26   :  { %775 = vmatprep.mubr.msk.f32.mxu0 %vm909_vm2, %v908_v0 }
  0x27   :  { %848 = vmatmul.mubr.msk.f32.gmra.mxu1 %vm74_vm1, %v46_v20 }
  0x28   :  { %850 = vmatprep.mubr.msk.f32.mxu1 %vm909_vm2, %v908_v0 }
  0x29   :  { %776 = vmatmul.mubr.msk.f32.gmra.mxu0 %vm74_vm1, %v22_v21 }
  0x2a   :  { %778 = vmatprep.mubr.msk.f32.mxu0 %vm909_vm2, %v908_v0 }
  0x2b   :  { %851 = vmatmul.mubr.msk.f32.gmra.mxu1 %vm74_vm1, %v47_v22 }
  0x2c   :  { %853 = vmatprep.mubr.msk.f32.mxu1 %vm909_vm2, %v908_v0 }
  0x2d   :  { %779 = vmatmul.mubr.msk.f32.gmra.mxu0 %vm74_vm1, %v23_v23 }
  0x2e   :  { %781 = vmatprep.mubr.msk.f32.mxu0 %vm909_vm2, %v908_v0 }
  0x2f   :  { %854 = vmatmul.mubr.msk.f32.gmra.mxu1 %vm74_vm1, %v48_v24 }
  0x30   :  { %856 = vmatprep.mubr.msk.f32.mxu1 %vm909_vm2, %v908_v0 }
  0x31   :  { %782 = vmatmul.mubr.msk.f32.gmra.mxu0 %vm74_vm1, %v24_v25 }
  0x32   :  { %784 = vmatprep.mubr.msk.f32.mxu0 %vm909_vm2, %v908_v0 }
  0x33   :  { %857 = vmatmul.mubr.msk.f32.gmra.mxu1 %vm74_vm1, %v49_v26 }
  0x34   :  { %859 = vmatprep.mubr.msk.f32.mxu1 %vm909_vm2, %v908_v0 }
  0x35   :  { %785 = vmatmul.mubr.msk.f32.gmra.mxu0 %vm74_vm1, %v25_v27 }
  0x36   :  { %787 = vmatprep.mubr.msk.f32.mxu0 %vm909_vm2, %v908_v0 }
  0x37   :  { %860 = vmatmul.mubr.msk.f32.gmra.mxu1 %vm74_vm1, %v50_v28 }
  0x38   :  { %862 = vmatprep.mubr.msk.f32.mxu1 %vm909_vm2, %v908_v0 }
  0x39   :  { %788 = vmatmul.mubr.msk.f32.gmra.mxu0 %vm74_vm1, %v26_v29 }
  0x3a   :  { %790 = vmatprep.mubr.msk.f32.mxu0 %vm909_vm2, %v908_v0 }
  0x3b   :  { %863 = vmatmul.mubr.msk.f32.gmra.mxu1 %vm74_vm1, %v51_v30 }
  0x3c   :  { %865 = vmatprep.mubr.msk.f32.mxu1 %vm909_vm2, %v908_v0 }
  0x3d   :  { %791 = vmatmul.mubr.msk.f32.gmra.mxu0 %vm74_vm1, %v27_v31 }
  0x3e   :  { %793 = vmatprep.mubr.msk.f32.mxu0 %vm909_vm2, %v908_v0 }
  0x3f   :  { %866 = vmatmul.mubr.msk.f32.gmra.mxu1 %vm74_vm1, %v52_v32 }
  0x40   :  { %868 = vmatprep.mubr.msk.f32.mxu1 %vm909_vm2, %v908_v0 }
  0x41   :  { %794 = vmatmul.mubr.msk.f32.gmra.mxu0 %vm74_vm1, %v28_v33 }
  0x42   :  { %796 = vmatprep.mubr.msk.f32.mxu0 %vm909_vm2, %v908_v0 }
  0x43   :  { %869 = vmatmul.mubr.msk.f32.gmra.mxu1 %vm74_vm1, %v53_v34 }
  0x44   :  { %871 = vmatprep.mubr.msk.f32.mxu1 %vm909_vm2, %v908_v0 }
  0x45   :  { %797 = vmatmul.mubr.msk.f32.gmra.mxu0 %vm74_vm1, %v29_v35 }
  0x46   :  { %799 = vmatprep.mubr.msk.f32.mxu0 %vm909_vm2, %v908_v0 }
  0x47   :  { %872 = vmatmul.mubr.msk.f32.gmra.mxu1 %vm74_vm1, %v54_v36 }
  0x48   :  { %874 = vmatprep.mubr.msk.f32.mxu1 %vm909_vm2, %v908_v0 }
  0x49   :  { %800 = vmatmul.mubr.msk.f32.gmra.mxu0 %vm74_vm1, %v30_v37 }
  0x4a   :  { %802 = vmatprep.mubr.msk.f32.mxu0 %vm909_vm2, %v908_v0 }
  0x4b   :  { %875 = vmatmul.mubr.msk.f32.gmra.mxu1 %vm74_vm1, %v55_v38 }
  0x4c   :  { %877 = vmatprep.mubr.msk.f32.mxu1 %vm909_vm2, %v908_v0 }
  0x4d   :  { %803 = vmatmul.mubr.msk.f32.gmra.mxu0 %vm74_vm1, %v31_v39 }
  0x4e   :  { %805 = vmatprep.mubr.msk.f32.mxu0 %vm909_vm2, %v908_v0 }
  0x4f   :  { %878 = vmatmul.mubr.msk.f32.gmra.mxu1 %vm74_vm1, %v56_v40 }
  0x50   :  { %880 = vmatprep.mubr.msk.f32.mxu1 %vm909_vm2, %v908_v0 }
  0x51   :  { %806 = vmatmul.mubr.msk.f32.gmra.mxu0 %vm74_vm1, %v32_v41 }
  0x52   :  { %808 = vmatprep.mubr.msk.f32.mxu0 %vm909_vm2, %v908_v0 }
  0x53   :  { %881 = vmatmul.mubr.msk.f32.gmra.mxu1 %vm74_vm1, %v57_v42 }
  0x54   :  { %883 = vmatprep.mubr.msk.f32.mxu1 %vm909_vm2, %v908_v0 }
  0x55   :  { %809 = vmatmul.mubr.msk.f32.gmra.mxu0 %vm74_vm1, %v33_v43 }
  0x56   :  { %811 = vmatprep.mubr.msk.f32.mxu0 %vm909_vm2, %v908_v0 }
  0x57   :  { %884 = vmatmul.mubr.msk.f32.gmra.mxu1 %vm74_vm1, %v58_v44 }
  0x58   :  { %886 = vmatprep.mubr.msk.f32.mxu1 %vm909_vm2, %v908_v0 }
  0x59   :  { %812 = vmatmul.mubr.msk.f32.gmra.mxu0 %vm74_vm1, %v34_v45 }
  0x5a   :  { %814 = vmatprep.mubr.msk.f32.mxu0 %vm909_vm2, %v908_v0 }
  0x5b   :  { %887 = vmatmul.mubr.msk.f32.gmra.mxu1 %vm74_vm1, %v59_v46 }
  0x5c   :  { %889 = vmatprep.mubr.msk.f32.mxu1 %vm909_vm2, %v908_v0 }
  0x5d   :  { %815 = vmatmul.mubr.msk.f32.gmra.mxu0 %vm74_vm1, %v35_v47 }
  0x5e   :  { %817 = vmatprep.mubr.msk.f32.mxu0 %vm909_vm2, %v908_v0 }
  0x5f   :  { %890 = vmatmul.mubr.msk.f32.gmra.mxu1 %vm74_vm1, %v60_v48 }
  0x60   :  { %892 = vmatprep.mubr.msk.f32.mxu1 %vm909_vm2, %v908_v0 }
  0x61   :  { %818 = vmatmul.mubr.msk.f32.gmra.mxu0 %vm74_vm1, %v36_v49 }
  0x62   :  { %820 = vmatprep.mubr.msk.f32.mxu0 %vm909_vm2, %v908_v0 }
  0x63   :  { %893 = vmatmul.mubr.msk.f32.gmra.mxu1 %vm74_vm1, %v61_v50 }
  0x64   :  { %895 = vmatprep.mubr.msk.f32.mxu1 %vm909_vm2, %v908_v0 }
  0x65   :  { %821 = vmatmul.mubr.msk.f32.gmra.mxu0 %vm74_vm1, %v37_v51 }
  0x66   :  { %823 = vmatprep.mubr.msk.f32.mxu0 %vm909_vm2, %v908_v0 }
  0x67   :  { %896 = vmatmul.mubr.msk.f32.gmra.mxu1 %vm74_vm1, %v62_v52 }
  0x69   :  { %824 = vmatmul.mubr.msk.f32.gmra.mxu0 %vm74_vm1, %v38_v53 }
  0xc9   :  { %v292_v55 = vpop.f32.mrf.mxu0 }
  0xca   :  { %v293_v56 = vadd.f32 %v1247_v54, %v292_v55 }
  0xcb   :  { %v753_v57 = vpop.f32.mrf.mxu0  ;;  %v417_v58 = vpop.f32.mrf.mxu1 }
  0xcc   :  { %v536_v59 = vmax.f32 %v293_v56, 0.0  ;;  %v418_v60 = vadd.f32 %v1247_v54, %v417_v58 }
  0xcd   :  { %v297_v61 = vpop.f32.mrf.mxu0  ;;  %v828_v62 = vpop.f32.mrf.mxu1 }
  0xce   :  { %586 = vst.msk [vmem:[%s1497_s3] sm:$0xff] %vm585_vm3, %v536_v59  ;;  %v561_v63 = vmax.f32 %v418_v60, 0.0  ;;  %v298_v0 = vadd.f32 %v1247_v54, %v297_v61 }
  0xcf   :  { %v756_v1 = vpop.f32.mrf.mxu0  ;;  %v422_v2 = vpop.f32.mrf.mxu1 }
  0xd0   :  { %611 = vst.msk [vmem:[%s1497_s3 + $0xc8] sm:$0xff] %vm585_vm3, %v561_v63  ;;  %v537_v3 = vmax.f32 %v298_v0, 0.0  ;;  %v423_v4 = vadd.f32 %v1247_v54, %v422_v2 }
  0xd1   :  { %v302_v5 = vpop.f32.mrf.mxu0  ;;  %v831_v6 = vpop.f32.mrf.mxu1 }
  0xd2   :  { %587 = vst.msk [vmem:[%s1497_s3 + $0x8] sm:$0xff] %vm585_vm3, %v537_v3  ;;  %v562_v7 = vmax.f32 %v423_v4, 0.0  ;;  %v303_v8 = vadd.f32 %v1247_v54, %v302_v5 }
  0xd3   :  { %v759_v9 = vpop.f32.mrf.mxu0  ;;  %v427_v10 = vpop.f32.mrf.mxu1 }
  0xd4   :  { %612 = vst.msk [vmem:[%s1497_s3 + $0xd0] sm:$0xff] %vm585_vm3, %v562_v7  ;;  %v538_v11 = vmax.f32 %v303_v8, 0.0  ;;  %v428_v12 = vadd.f32 %v1247_v54, %v427_v10 }
  0xd5   :  { %v307_v13 = vpop.f32.mrf.mxu0  ;;  %v834_v14 = vpop.f32.mrf.mxu1 }
  0xd6   :  { %588 = vst.msk [vmem:[%s1497_s3 + $0x10] sm:$0xff] %vm585_vm3, %v538_v11  ;;  %v563_v15 = vmax.f32 %v428_v12, 0.0  ;;  %v308_v16 = vadd.f32 %v1247_v54, %v307_v13 }
  0xd7   :  { %v762_v17 = vpop.f32.mrf.mxu0  ;;  %v432_v18 = vpop.f32.mrf.mxu1 }
  0xd8   :  { %613 = vst.msk [vmem:[%s1497_s3 + $0xd8] sm:$0xff] %vm585_vm3, %v563_v15  ;;  %v539_v19 = vmax.f32 %v308_v16, 0.0  ;;  %v433_v20 = vadd.f32 %v1247_v54, %v432_v18 }
  0xd9   :  { %v312_v21 = vpop.f32.mrf.mxu0  ;;  %v837_v22 = vpop.f32.mrf.mxu1 }
  0xda   :  { %589 = vst.msk [vmem:[%s1497_s3 + $0x18] sm:$0xff] %vm585_vm3, %v539_v19  ;;  %v564_v23 = vmax.f32 %v433_v20, 0.0  ;;  %v313_v24 = vadd.f32 %v1247_v54, %v312_v21 }
  0xdb   :  { %v765_v25 = vpop.f32.mrf.mxu0  ;;  %v437_v26 = vpop.f32.mrf.mxu1 }
  0xdc   :  { %614 = vst.msk [vmem:[%s1497_s3 + $0xe0] sm:$0xff] %vm585_vm3, %v564_v23  ;;  %v540_v27 = vmax.f32 %v313_v24, 0.0  ;;  %v438_v28 = vadd.f32 %v1247_v54, %v437_v26 }
  0xdd   :  { %v317_v29 = vpop.f32.mrf.mxu0  ;;  %v840_v30 = vpop.f32.mrf.mxu1 }
  0xde   :  { %590 = vst.msk [vmem:[%s1497_s3 + $0x20] sm:$0xff] %vm585_vm3, %v540_v27  ;;  %v565_v31 = vmax.f32 %v438_v28, 0.0  ;;  %v318_v32 = vadd.f32 %v1247_v54, %v317_v29 }
  0xdf   :  { %v768_v33 = vpop.f32.mrf.mxu0  ;;  %v442_v34 = vpop.f32.mrf.mxu1 }
  0xe0   :  { %615 = vst.msk [vmem:[%s1497_s3 + $0xe8] sm:$0xff] %vm585_vm3, %v565_v31  ;;  %v541_v35 = vmax.f32 %v318_v32, 0.0  ;;  %v443_v36 = vadd.f32 %v1247_v54, %v442_v34 }
  0xe1   :  { %v322_v37 = vpop.f32.mrf.mxu0  ;;  %v843_v38 = vpop.f32.mrf.mxu1 }
  0xe2   :  { %591 = vst.msk [vmem:[%s1497_s3 + $0x28] sm:$0xff] %vm585_vm3, %v541_v35  ;;  %v566_v39 = vmax.f32 %v443_v36, 0.0  ;;  %v323_v40 = vadd.f32 %v1247_v54, %v322_v37 }
  0xe3   :  { %v771_v41 = vpop.f32.mrf.mxu0  ;;  %v447_v42 = vpop.f32.mrf.mxu1 }
  0xe4   :  { %616 = vst.msk [vmem:[%s1497_s3 + $0xf0] sm:$0xff] %vm585_vm3, %v566_v39  ;;  %v542_v43 = vmax.f32 %v323_v40, 0.0  ;;  %v448_v44 = vadd.f32 %v1247_v54, %v447_v42 }
  0xe5   :  { %v327_v45 = vpop.f32.mrf.mxu0  ;;  %v846_v46 = vpop.f32.mrf.mxu1 }
  0xe6   :  { %592 = vst.msk [vmem:[%s1497_s3 + $0x30] sm:$0xff] %vm585_vm3, %v542_v43  ;;  %v567_v47 = vmax.f32 %v448_v44, 0.0  ;;  %v328_v48 = vadd.f32 %v1247_v54, %v327_v45 }
  0xe7   :  { %v774_v49 = vpop.f32.mrf.mxu0  ;;  %v452_v50 = vpop.f32.mrf.mxu1 }
  0xe8   :  { %617 = vst.msk [vmem:[%s1497_s3 + $0xf8] sm:$0xff] %vm585_vm3, %v567_v47  ;;  %v543_v51 = vmax.f32 %v328_v48, 0.0  ;;  %v453_v52 = vadd.f32 %v1247_v54, %v452_v50 }
  0xe9   :  { %v332_v53 = vpop.f32.mrf.mxu0  ;;  %v849_v55 = vpop.f32.mrf.mxu1 }
  0xea   :  { %593 = vst.msk [vmem:[%s1497_s3 + $0x38] sm:$0xff] %vm585_vm3, %v543_v51  ;;  %v568_v56 = vmax.f32 %v453_v52, 0.0  ;;  %v333_v57 = vadd.f32 %v1247_v54, %v332_v53 }
  0xeb   :  { %v777_v58 = vpop.f32.mrf.mxu0  ;;  %v457_v59 = vpop.f32.mrf.mxu1 }
  0xec   :  { %618 = vst.msk [vmem:[%s1497_s3 + $0x100] sm:$0xff] %vm585_vm3, %v568_v56  ;;  %v544_v60 = vmax.f32 %v333_v57, 0.0  ;;  %v458_v61 = vadd.f32 %v1247_v54, %v457_v59 }
  0xed   :  { %v337_v62 = vpop.f32.mrf.mxu0  ;;  %v852_v63 = vpop.f32.mrf.mxu1 }
  0xee   :  { %594 = vst.msk [vmem:[%s1497_s3 + $0x40] sm:$0xff] %vm585_vm3, %v544_v60  ;;  %v569_v0 = vmax.f32 %v458_v61, 0.0  ;;  %v338_v1 = vadd.f32 %v1247_v54, %v337_v62 }
  0xef   :  { %v780_v2 = vpop.f32.mrf.mxu0  ;;  %v462_v3 = vpop.f32.mrf.mxu1 }
  0xf0   :  { %619 = vst.msk [vmem:[%s1497_s3 + $0x108] sm:$0xff] %vm585_vm3, %v569_v0  ;;  %v545_v4 = vmax.f32 %v338_v1, 0.0  ;;  %v463_v5 = vadd.f32 %v1247_v54, %v462_v3 }
  0xf1   :  { %v342_v6 = vpop.f32.mrf.mxu0  ;;  %v855_v7 = vpop.f32.mrf.mxu1 }
  0xf2   :  { %595 = vst.msk [vmem:[%s1497_s3 + $0x48] sm:$0xff] %vm585_vm3, %v545_v4  ;;  %v570_v8 = vmax.f32 %v463_v5, 0.0  ;;  %v343_v9 = vadd.f32 %v1247_v54, %v342_v6 }
  0xf3   :  { %v783_v10 = vpop.f32.mrf.mxu0  ;;  %v467_v11 = vpop.f32.mrf.mxu1 }
  0xf4   :  { %620 = vst.msk [vmem:[%s1497_s3 + $0x110] sm:$0xff] %vm585_vm3, %v570_v8  ;;  %v546_v12 = vmax.f32 %v343_v9, 0.0  ;;  %v468_v13 = vadd.f32 %v1247_v54, %v467_v11 }
  0xf5   :  { %v347_v14 = vpop.f32.mrf.mxu0  ;;  %v858_v15 = vpop.f32.mrf.mxu1 }
  0xf6   :  { %596 = vst.msk [vmem:[%s1497_s3 + $0x50] sm:$0xff] %vm585_vm3, %v546_v12  ;;  %v571_v16 = vmax.f32 %v468_v13, 0.0  ;;  %v348_v17 = vadd.f32 %v1247_v54, %v347_v14 }
  0xf7   :  { %v786_v18 = vpop.f32.mrf.mxu0  ;;  %v472_v19 = vpop.f32.mrf.mxu1 }
  0xf8   :  { %621 = vst.msk [vmem:[%s1497_s3 + $0x118] sm:$0xff] %vm585_vm3, %v571_v16  ;;  %v547_v20 = vmax.f32 %v348_v17, 0.0  ;;  %v473_v21 = vadd.f32 %v1247_v54, %v472_v19 }
  0xf9   :  { %v352_v22 = vpop.f32.mrf.mxu0  ;;  %v861_v23 = vpop.f32.mrf.mxu1 }
  0xfa   :  { %597 = vst.msk [vmem:[%s1497_s3 + $0x58] sm:$0xff] %vm585_vm3, %v547_v20  ;;  %v572_v24 = vmax.f32 %v473_v21, 0.0  ;;  %v353_v25 = vadd.f32 %v1247_v54, %v352_v22 }
  0xfb   :  { %v789_v26 = vpop.f32.mrf.mxu0  ;;  %v477_v27 = vpop.f32.mrf.mxu1 }
  0xfc   :  { %622 = vst.msk [vmem:[%s1497_s3 + $0x120] sm:$0xff] %vm585_vm3, %v572_v24  ;;  %v548_v28 = vmax.f32 %v353_v25, 0.0  ;;  %v478_v29 = vadd.f32 %v1247_v54, %v477_v27 }
  0xfd   :  { %v357_v30 = vpop.f32.mrf.mxu0  ;;  %v864_v31 = vpop.f32.mrf.mxu1 }
  0xfe   :  { %598 = vst.msk [vmem:[%s1497_s3 + $0x60] sm:$0xff] %vm585_vm3, %v548_v28  ;;  %v573_v32 = vmax.f32 %v478_v29, 0.0  ;;  %v358_v33 = vadd.f32 %v1247_v54, %v357_v30 }
  0xff   :  { %v792_v34 = vpop.f32.mrf.mxu0  ;;  %v482_v35 = vpop.f32.mrf.mxu1 }
 0x100   :  { %623 = vst.msk [vmem:[%s1497_s3 + $0x128] sm:$0xff] %vm585_vm3, %v573_v32  ;;  %v549_v36 = vmax.f32 %v358_v33, 0.0  ;;  %v483_v37 = vadd.f32 %v1247_v54, %v482_v35 }
 0x101   :  { %v362_v38 = vpop.f32.mrf.mxu0  ;;  %v867_v39 = vpop.f32.mrf.mxu1 }
 0x102   :  { %599 = vst.msk [vmem:[%s1497_s3 + $0x68] sm:$0xff] %vm585_vm3, %v549_v36  ;;  %v574_v40 = vmax.f32 %v483_v37, 0.0  ;;  %v363_v41 = vadd.f32 %v1247_v54, %v362_v38 }
 0x103   :  { %v795_v42 = vpop.f32.mrf.mxu0  ;;  %v487_v43 = vpop.f32.mrf.mxu1 }
 0x104   :  { %624 = vst.msk [vmem:[%s1497_s3 + $0x130] sm:$0xff] %vm585_vm3, %v574_v40  ;;  %v550_v44 = vmax.f32 %v363_v41, 0.0  ;;  %v488_v45 = vadd.f32 %v1247_v54, %v487_v43 }
 0x105   :  { %v367_v46 = vpop.f32.mrf.mxu0  ;;  %v870_v47 = vpop.f32.mrf.mxu1 }
 0x106   :  { %600 = vst.msk [vmem:[%s1497_s3 + $0x70] sm:$0xff] %vm585_vm3, %v550_v44  ;;  %v575_v48 = vmax.f32 %v488_v45, 0.0  ;;  %v368_v49 = vadd.f32 %v1247_v54, %v367_v46 }
 0x107   :  { %v798_v50 = vpop.f32.mrf.mxu0  ;;  %v492_v51 = vpop.f32.mrf.mxu1 }
 0x108   :  { %625 = vst.msk [vmem:[%s1497_s3 + $0x138] sm:$0xff] %vm585_vm3, %v575_v48  ;;  %v551_v52 = vmax.f32 %v368_v49, 0.0  ;;  %v493_v53 = vadd.f32 %v1247_v54, %v492_v51 }
 0x109   :  { %v372_v55 = vpop.f32.mrf.mxu0  ;;  %v873_v56 = vpop.f32.mrf.mxu1 }
 0x10a   :  { %601 = vst.msk [vmem:[%s1497_s3 + $0x78] sm:$0xff] %vm585_vm3, %v551_v52  ;;  %v576_v57 = vmax.f32 %v493_v53, 0.0  ;;  %v373_v58 = vadd.f32 %v1247_v54, %v372_v55 }
 0x10b   :  { %v801_v59 = vpop.f32.mrf.mxu0  ;;  %v497_v60 = vpop.f32.mrf.mxu1 }
 0x10c   :  { %626 = vst.msk [vmem:[%s1497_s3 + $0x140] sm:$0xff] %vm585_vm3, %v576_v57  ;;  %v552_v61 = vmax.f32 %v373_v58, 0.0  ;;  %v498_v62 = vadd.f32 %v1247_v54, %v497_v60 }
 0x10d   :  { %v377_v63 = vpop.f32.mrf.mxu0  ;;  %v876_v0 = vpop.f32.mrf.mxu1 }
 0x10e   :  { %602 = vst.msk [vmem:[%s1497_s3 + $0x80] sm:$0xff] %vm585_vm3, %v552_v61  ;;  %v577_v1 = vmax.f32 %v498_v62, 0.0  ;;  %v378_v2 = vadd.f32 %v1247_v54, %v377_v63 }
 0x10f   :  { %v804_v3 = vpop.f32.mrf.mxu0  ;;  %v502_v4 = vpop.f32.mrf.mxu1 }
 0x110   :  { %627 = vst.msk [vmem:[%s1497_s3 + $0x148] sm:$0xff] %vm585_vm3, %v577_v1  ;;  %v553_v5 = vmax.f32 %v378_v2, 0.0  ;;  %v503_v6 = vadd.f32 %v1247_v54, %v502_v4 }
 0x111   :  { %v382_v7 = vpop.f32.mrf.mxu0  ;;  %v879_v8 = vpop.f32.mrf.mxu1 }
 0x112   :  { %603 = vst.msk [vmem:[%s1497_s3 + $0x88] sm:$0xff] %vm585_vm3, %v553_v5  ;;  %v578_v9 = vmax.f32 %v503_v6, 0.0  ;;  %v383_v10 = vadd.f32 %v1247_v54, %v382_v7 }
 0x113   :  { %v807_v11 = vpop.f32.mrf.mxu0  ;;  %v507_v12 = vpop.f32.mrf.mxu1 }
 0x114   :  { %628 = vst.msk [vmem:[%s1497_s3 + $0x150] sm:$0xff] %vm585_vm3, %v578_v9  ;;  %v554_v13 = vmax.f32 %v383_v10, 0.0  ;;  %v508_v14 = vadd.f32 %v1247_v54, %v507_v12 }
 0x115   :  { %v387_v15 = vpop.f32.mrf.mxu0  ;;  %v882_v16 = vpop.f32.mrf.mxu1 }
 0x116   :  { %604 = vst.msk [vmem:[%s1497_s3 + $0x90] sm:$0xff] %vm585_vm3, %v554_v13  ;;  %v579_v17 = vmax.f32 %v508_v14, 0.0  ;;  %v388_v18 = vadd.f32 %v1247_v54, %v387_v15 }
 0x117   :  { %v810_v19 = vpop.f32.mrf.mxu0  ;;  %v512_v20 = vpop.f32.mrf.mxu1 }
 0x118   :  { %629 = vst.msk [vmem:[%s1497_s3 + $0x158] sm:$0xff] %vm585_vm3, %v579_v17  ;;  %v555_v21 = vmax.f32 %v388_v18, 0.0  ;;  %v513_v22 = vadd.f32 %v1247_v54, %v512_v20 }
 0x119   :  { %v392_v23 = vpop.f32.mrf.mxu0  ;;  %v885_v24 = vpop.f32.mrf.mxu1 }
 0x11a   :  { %605 = vst.msk [vmem:[%s1497_s3 + $0x98] sm:$0xff] %vm585_vm3, %v555_v21  ;;  %v580_v25 = vmax.f32 %v513_v22, 0.0  ;;  %v393_v26 = vadd.f32 %v1247_v54, %v392_v23 }
 0x11b   :  { %v813_v27 = vpop.f32.mrf.mxu0  ;;  %v517_v28 = vpop.f32.mrf.mxu1 }
 0x11c   :  { %630 = vst.msk [vmem:[%s1497_s3 + $0x160] sm:$0xff] %vm585_vm3, %v580_v25  ;;  %v556_v29 = vmax.f32 %v393_v26, 0.0  ;;  %v518_v30 = vadd.f32 %v1247_v54, %v517_v28 }
 0x11d   :  { %v397_v31 = vpop.f32.mrf.mxu0  ;;  %v888_v32 = vpop.f32.mrf.mxu1 }
 0x11e   :  { %606 = vst.msk [vmem:[%s1497_s3 + $0xa0] sm:$0xff] %vm585_vm3, %v556_v29  ;;  %v581_v33 = vmax.f32 %v518_v30, 0.0  ;;  %v398_v34 = vadd.f32 %v1247_v54, %v397_v31 }
 0x11f   :  { %v816_v35 = vpop.f32.mrf.mxu0  ;;  %v522_v36 = vpop.f32.mrf.mxu1 }
 0x120   :  { %631 = vst.msk [vmem:[%s1497_s3 + $0x168] sm:$0xff] %vm585_vm3, %v581_v33  ;;  %v557_v37 = vmax.f32 %v398_v34, 0.0  ;;  %v523_v38 = vadd.f32 %v1247_v54, %v522_v36 }
 0x121   :  { %v402_v39 = vpop.f32.mrf.mxu0  ;;  %v891_v40 = vpop.f32.mrf.mxu1 }
 0x122   :  { %607 = vst.msk [vmem:[%s1497_s3 + $0xa8] sm:$0xff] %vm585_vm3, %v557_v37  ;;  %v582_v41 = vmax.f32 %v523_v38, 0.0  ;;  %v403_v42 = vadd.f32 %v1247_v54, %v402_v39 }
 0x123   :  { %v819_v43 = vpop.f32.mrf.mxu0  ;;  %v527_v44 = vpop.f32.mrf.mxu1 }
 0x124   :  { %632 = vst.msk [vmem:[%s1497_s3 + $0x170] sm:$0xff] %vm585_vm3, %v582_v41  ;;  %v558_v45 = vmax.f32 %v403_v42, 0.0  ;;  %v528_v46 = vadd.f32 %v1247_v54, %v527_v44 }
 0x125   :  { %v407_v47 = vpop.f32.mrf.mxu0  ;;  %v894_v48 = vpop.f32.mrf.mxu1 }
 0x126   :  { %608 = vst.msk [vmem:[%s1497_s3 + $0xb0] sm:$0xff] %vm585_vm3, %v558_v45  ;;  %v583_v49 = vmax.f32 %v528_v46, 0.0  ;;  %v408_v50 = vadd.f32 %v1247_v54, %v407_v47 }
 0x127   :  { %v822_v51 = vpop.f32.mrf.mxu0  ;;  %v532_v52 = vpop.f32.mrf.mxu1 }
 0x128   :  { %633 = vst.msk [vmem:[%s1497_s3 + $0x178] sm:$0xff] %vm585_vm3, %v583_v49  ;;  %v559_v53 = vmax.f32 %v408_v50, 0.0  ;;  %v533_v55 = vadd.f32 %v1247_v54, %v532_v52 }
 0x129   :  { %v412_v56 = vpop.f32.mrf.mxu0  ;;  %v897_v57 = vpop.f32.mrf.mxu1 }
 0x12a   :  { %609 = vst.msk [vmem:[%s1497_s3 + $0xb8] sm:$0xff] %vm585_vm3, %v559_v53  ;;  %v584_v58 = vmax.f32 %v533_v55, 0.0  ;;  %v413_v59 = vadd.f32 %v1247_v54, %v412_v56 }
 0x12b   :  { %v825_v60 = vpop.f32.mrf.mxu0 }
 0x12c   :  { %634 = vst.msk [vmem:[%s1497_s3 + $0x180] sm:$0xff] %vm585_vm3, %v584_v58  ;;  %v560_v61 = vmax.f32 %v413_v59, 0.0 }
 0x12e   :  { %610 = vst.msk [vmem:[%s1497_s3 + $0xc0] sm:$0xff] %vm585_vm3, %v560_v61 }

// kernel: encoder_forward.4
= control target key start
LH: loop header
LB: loop body
LE: loop exit
PB: predicated region body
PF: predicated region fallthrough
CT: control target
= control target key end

     0   :  { %v514_v0 = vmov 0.0   ;;  %vm515_vm0 = vmmov 0   ;;  %vm49_vm1 = vcmask 588800   ;;  %vm219_vm2 = vcmask 130048   ;;  %s780_s1 = inlined_call_operand.vmem [shape: f32[72,16], index: 1, kind: input, shape index: {}]   ;;  %s781_s0 = inlined_call_operand.vmem [shape: f32[98,72], index: 0, kind: input, shape index: {}]   ;;  %s782_s2 = inlined_call_operand.vmem [shape: f32[1,16], index: 2, kind: input, shape index: {}]   ;;  %s783_s3 = inlined_call_operand.vmem [shape: f32[1,16], index: 3, kind: input, shape index: {}]   ;;  %s784_s4 = inlined_call_operand.vmem [shape: f32[1,16], index: 4, kind: input, shape index: {}]   ;;  %s785_s5 = inlined_call_operand.vmem [shape: f32[98,16], index: 5, kind: output, shape index: {}]  }
   0x1   :  { %435 = vmatprep.subr.mxu0 %v514_v0  ;;  %v41_v1 = vld [vmem:[%s780_s1 + $0x40] sm:$0xff]  ;;  %v40_v2 = vld [vmem:[%s780_s1 + $0x38] sm:$0xff]  ;;  %492 = vmatprep.subr.mxu1 %v514_v0  ;;  %v39_v3 = vld [vmem:[%s780_s1 + $0x30] sm:$0xff]  ;;  %vm243_vm3 = vcmask 123904  }
   0x2   :  { %436 = vmatpush3.msra.mxu0 %v41_v1  ;;  %501 = vmatpush3.msra.mxu1 %v41_v1  ;;  %v38_v4 = vld [vmem:[%s780_s1 + $0x28] sm:$0xff]  ;;  %v37_v5 = vld [vmem:[%s780_s1 + $0x20] sm:$0xff]  ;;  %v36_v6 = vld [vmem:[%s780_s1 + $0x18] sm:$0xff] }
   0x3   :  { %437 = vmatprep.subr.mxu0 %v514_v0  ;;  %493 = vmatprep.subr.mxu1 %v514_v0  ;;  %v35_v7 = vld [vmem:[%s780_s1 + $0x10] sm:$0xff]  ;;  %v34_v8 = vld [vmem:[%s780_s1 + $0x8] sm:$0xff]  ;;  %v33_v9 = vld [vmem:[%s780_s1] sm:$0xff] }
   0x4   :  { %438 = vmatpush3.msra.mxu0 %v40_v2  ;;  %502 = vmatpush3.msra.mxu1 %v40_v2  ;;  %v20_v10 = vld [vmem:[%s781_s0] sm:$0xff]  ;;  %v27_v11 = vld [vmem:[%s781_s0 + $0x38] sm:$0xff]  ;;  %v21_v12 = vld [vmem:[%s781_s0 + $0x8] sm:$0xff] }
   0x5   :  { %439 = vmatprep.subr.mxu0 %v514_v0  ;;  %453 = vmatprep.mubr.msk.f32.mxu0 %vm515_vm0, %v514_v0  ;;  %v28_v13 = vld [vmem:[%s781_s0 + $0x40] sm:$0xff]  ;;  %v22_v14 = vld [vmem:[%s781_s0 + $0x10] sm:$0xff]  ;;  %v29_v15 = vld [vmem:[%s781_s0 + $0x48] sm:$0xff] }
   0x6   :  { %440 = vmatpush3.msra.mxu0 %v39_v3  ;;  %494 = vmatprep.subr.mxu1 %v514_v0  ;;  %v23_v16 = vld [vmem:[%s781_s0 + $0x18] sm:$0xff]  ;;  %v30_v17 = vld [vmem:[%s781_s0 + $0x50] sm:$0xff]  ;;  %v24_v18 = vld [vmem:[%s781_s0 + $0x20] sm:$0xff] }
   0x7   :  { %441 = vmatprep.subr.mxu0 %v514_v0  ;;  %503 = vmatpush3.msra.mxu1 %v39_v3  ;;  %v31_v19 = vld [vmem:[%s781_s0 + $0x58] sm:$0xff]  ;;  %v25_v20 = vld [vmem:[%s781_s0 + $0x28] sm:$0xff]  ;;  %v32_v21 = vld [vmem:[%s781_s0 + $0x60] sm:$0x3] }
   0x8   :  { %442 = vmatpush3.msra.mxu0 %v38_v4  ;;  %495 = vmatprep.subr.mxu1 %v514_v0  ;;  %v26_v22 = vld [vmem:[%s781_s0 + $0x30] sm:$0xff]  ;;  %v397_v32 = vld [vmem:[%s782_s2] ss:$0 sm:$0xff] }
   0x9   :  { %443 = vmatprep.subr.mxu0 %v514_v0  ;;  %504 = vmatpush3.msra.mxu1 %v38_v4 }
   0xa   :  { %444 = vmatpush3.msra.mxu0 %v37_v5  ;;  %496 = vmatprep.subr.mxu1 %v514_v0 }
   0xb   :  { %445 = vmatprep.subr.mxu0 %v514_v0  ;;  %505 = vmatpush3.msra.mxu1 %v37_v5 }
   0xc   :  { %446 = vmatpush3.msra.mxu0 %v36_v6  ;;  %497 = vmatprep.subr.mxu1 %v514_v0 }
   0xd   :  { %447 = vmatprep.subr.mxu0 %v514_v0  ;;  %506 = vmatpush3.msra.mxu1 %v36_v6 }
   0xe   :  { %448 = vmatpush3.msra.mxu0 %v35_v7  ;;  %498 = vmatprep.subr.mxu1 %v514_v0 }
   0xf   :  { %449 = vmatprep.subr.mxu0 %v514_v0  ;;  %507 = vmatpush3.msra.mxu1 %v35_v7 }
  0x10   :  { %450 = vmatpush3.msra.mxu0 %v34_v8  ;;  %499 = vmatprep.subr.mxu1 %v514_v0 }
  0x11   :  { %451 = vmatprep.subr.mxu0 %v514_v0  ;;  %508 = vmatpush3.msra.mxu1 %v34_v8 }
  0x12   :  { %452 = vmatpush3.msra.mxu0 %v33_v9  ;;  %500 = vmatprep.subr.mxu1 %v514_v0 }
  0x13   :  { %454 = vmatmul.mubr.msk.f32.vlgmr.msra.gmra.mxu0 %vm49_vm1, %v20_v10  ;;  %509 = vmatpush3.msra.mxu1 %v33_v9 }
  0x14   :  { %456 = vmatprep.mubr.msk.f32.mxu0 %vm515_vm0, %v514_v0  ;;  %474 = vmatprep.mubr.msk.f32.mxu1 %vm515_vm0, %v514_v0 }
  0x15   :  { %475 = vmatmul.mubr.msk.f32.vlgmr.msra.gmra.mxu1 %vm49_vm1, %v27_v11 }
  0x16   :  { %477 = vmatprep.mubr.msk.f32.mxu1 %vm515_vm0, %v514_v0 }
  0x17   :  { %457 = vmatmul.mubr.msk.f32.gmra.mxu0 %vm49_vm1, %v21_v12 }
  0x18   :  { %459 = vmatprep.mubr.msk.f32.mxu0 %vm515_vm0, %v514_v0 }
  0x19   :  { %478 = vmatmul.mubr.msk.f32.gmra.mxu1 %vm49_vm1, %v28_v13 }
  0x1a   :  { %480 = vmatprep.mubr.msk.f32.mxu1 %vm515_vm0, %v514_v0 }
  0x1b   :  { %460 = vmatmul.mubr.msk.f32.gmra.mxu0 %vm49_vm1, %v22_v14 }
  0x1c   :  { %462 = vmatprep.mubr.msk.f32.mxu0 %vm515_vm0, %v514_v0 }
  0x1d   :  { %481 = vmatmul.mubr.msk.f32.gmra.mxu1 %vm49_vm1, %v29_v15 }
  0x1e   :  { %483 = vmatprep.mubr.msk.f32.mxu1 %vm515_vm0, %v514_v0 }
  0x1f   :  { %463 = vmatmul.mubr.msk.f32.gmra.mxu0 %vm49_vm1, %v23_v16 }
  0x20   :  { %465 = vmatprep.mubr.msk.f32.mxu0 %vm515_vm0, %v514_v0 }
  0x21   :  { %484 = vmatmul.mubr.msk.f32.gmra.mxu1 %vm49_vm1, %v30_v17 }
  0x22   :  { %486 = vmatprep.mubr.msk.f32.mxu1 %vm515_vm0, %v514_v0 }
  0x23   :  { %466 = vmatmul.mubr.msk.f32.gmra.mxu0 %vm49_vm1, %v24_v18 }
  0x24   :  { %468 = vmatprep.mubr.msk.f32.mxu0 %vm515_vm0, %v514_v0 }
  0x25   :  { %487 = vmatmul.mubr.msk.f32.gmra.mxu1 %vm49_vm1, %v31_v19 }
  0x26   :  { %489 = vmatprep.mubr.msk.f32.mxu1 %vm515_vm0, %v514_v0 }
  0x27   :  { %469 = vmatmul.mubr.msk.f32.gmra.mxu0 %vm49_vm1, %v25_v20 }
  0x28   :  { %471 = vmatprep.mubr.msk.f32.mxu0 %vm515_vm0, %v514_v0 }
  0x29   :  { %490 = vmatmul.mubr.msk.f32.gmra.mxu1 %vm49_vm1, %v32_v21 }
  0x2b   :  { %472 = vmatmul.mubr.msk.f32.gmra.mxu0 %vm49_vm1, %v26_v22 }
  0xd3   :  { %v155_v23 = vpop.f32.mrf.mxu0 }
  0xd4   :  { %v156_v38 = vadd.f32 %v397_v32, %v155_v23 }
  0xd5   :  { %v455_v24 = vpop.f32.mrf.mxu0  ;;  %v190_v25 = vpop.f32.mrf.mxu1 }
  0xd6   :  { %v220_v46 = vsel %vm219_vm2, %v156_v38, 0.0  ;;  %v191_v1 = vadd.f32 %v397_v32, %v190_v25 }
  0xd7   :  { %v160_v26 = vpop.f32.mrf.mxu0  ;;  %v476_v27 = vpop.f32.mrf.mxu1 }
  0xd8   :  { %v672_v35 = vadd.f32 %v397_v32, %v160_v26  ;;  %v233_v8 = vsel %vm219_vm2, %v191_v1, 0.0 }
  0xd9   :  { %v458_v28 = vpop.f32.mrf.mxu0  ;;  %v195_v29 = vpop.f32.mrf.mxu1 }
  0xda   :  { %v221_v42 = vsel %vm219_vm2, %v672_v35, 0.0  ;;  %v196_v5 = vadd.f32 %v397_v32, %v195_v29 }
  0xdb   :  { %v165_v30 = vpop.f32.mrf.mxu0  ;;  %v479_v31 = vpop.f32.mrf.mxu1  ;;  %v222_v49 = vadd.f32 %v221_v42, %v220_v46 }
  0xdc   :  { %v166_v39 = vadd.f32 %v397_v32, %v165_v30  ;;  %v235_v11 = vsel %vm219_vm2, %v196_v5, 0.0 }
  0xdd   :  { %v461_v33 = vpop.f32.mrf.mxu0  ;;  %v200_v34 = vpop.f32.mrf.mxu1 }
  0xde   :  { %v223_v47 = vsel %vm219_vm2, %v166_v39, 0.0  ;;  %v201_v9 = vadd.f32 %v397_v32, %v200_v34 }
  0xdf   :  { %v170_v36 = vpop.f32.mrf.mxu0  ;;  %v482_v37 = vpop.f32.mrf.mxu1  ;;  %v224_v53 = vadd.f32 %v223_v47, %v222_v49 }
  0xe0   :  { %v171_v43 = vadd.f32 %v397_v32, %v170_v36  ;;  %v237_v14 = vsel %vm219_vm2, %v201_v9, 0.0 }
  0xe1   :  { %v464_v40 = vpop.f32.mrf.mxu0  ;;  %v205_v41 = vpop.f32.mrf.mxu1 }
  0xe2   :  { %v225_v52 = vsel %vm219_vm2, %v171_v43, 0.0  ;;  %v206_v12 = vadd.f32 %v397_v32, %v205_v41 }
  0xe3   :  { %v175_v44 = vpop.f32.mrf.mxu0  ;;  %v485_v45 = vpop.f32.mrf.mxu1  ;;  %v226_v58 = vadd.f32 %v225_v52, %v224_v53 }
  0xe4   :  { %v176_v48 = vadd.f32 %v397_v32, %v175_v44  ;;  %v239_v18 = vsel %vm219_vm2, %v206_v12, 0.0 }
  0xe5   :  { %v467_v50 = vpop.f32.mrf.mxu0  ;;  %v210_v51 = vpop.f32.mrf.mxu1 }
  0xe6   :  { %v227_v56 = vsel %vm219_vm2, %v176_v48, 0.0  ;;  %v211_v15 = vadd.f32 %v397_v32, %v210_v51 }
  0xe7   :  { %v180_v54 = vpop.f32.mrf.mxu0  ;;  %v488_v55 = vpop.f32.mrf.mxu1  ;;  %v228_v62 = vadd.f32 %v227_v56, %v226_v58 }
  0xe8   :  { %v181_v57 = vadd.f32 %v397_v32, %v180_v54  ;;  %v241_v20 = vsel %vm219_vm2, %v211_v15, 0.0 }
  0xe9   :  { %v470_v59 = vpop.f32.mrf.mxu0  ;;  %v215_v60 = vpop.f32.mrf.mxu1 }
  0xea   :  { %v229_v61 = vsel %vm219_vm2, %v181_v57, 0.0  ;;  %v216_v16 = vadd.f32 %v397_v32, %v215_v60 }
  0xeb   :  { %v185_v63 = vpop.f32.mrf.mxu0  ;;  %v491_v0 = vpop.f32.mrf.mxu1  ;;  %v230_v3 = vadd.f32 %v229_v61, %v228_v62 }
  0xec   :  { %v186_v2 = vadd.f32 %v397_v32, %v185_v63  ;;  %v244_v21 = vsel %vm243_vm3, %v216_v16, 0.0 }
  0xed   :  { %v473_v4 = vpop.f32.mrf.mxu0 }
  0xee   :  { %v231_v6 = vsel %vm219_vm2, %v186_v2, 0.0 }
  0xef   :  { %v232_v7 = vadd.f32 %v231_v6, %v230_v3 }
  0xf1   :  { %v234_v10 = vadd.f32 %v233_v8, %v232_v7 }
  0xf3   :  { %v236_v13 = vadd.f32 %v235_v11, %v234_v10 }
  0xf5   :  { %v238_v17 = vadd.f32 %v237_v14, %v236_v13 }
  0xf7   :  { %v240_v19 = vadd.f32 %v239_v18, %v238_v17 }
  0xf9   :  { %v242_v22 = vadd.f32 %v241_v20, %v240_v19 }
  0xfb   :  { %v245_v23 = vadd.f32 %v244_v21, %v242_v22 }
  0xfd   :  { %v246_v24 = vrot.slane %v245_v23, 4 }
  0xff   :  { %v247_v25 = vadd.f32 %v246_v24, %v245_v23 }
 0x101   :  { %v248_v26 = vrot.slane %v247_v25, 2 }
 0x103   :  { %v249_v27 = vadd.f32 %v248_v26, %v247_v25 }
 0x105   :  { %v250_v28 = vrot.slane %v249_v27, 1 }
 0x107   :  { %v251_v29 = vadd.f32 %v250_v28, %v249_v27 }
 0x109   :  { %v253_v30 = vmul.f32 0.010204081, %v251_v29 }
 0x10b   :  { %v688_v31 = vsub.f32 %v156_v38, %v253_v30  ;;  %v691_v32 = vsub.f32 %v672_v35, %v253_v30  ;;  %v693_v33 = vsub.f32 %v166_v39, %v253_v30  ;;  %v695_v34 = vsub.f32 %v171_v43, %v253_v30 }
 0x10c   :  { %v258_v40 = vsub.f32 %v176_v48, %v253_v30  ;;  %v259_v42 = vsub.f32 %v181_v57, %v253_v30  ;;  %v260_v44 = vsub.f32 %v186_v2, %v253_v30  ;;  %v261_v49 = vsub.f32 %v191_v1, %v253_v30 }
 0x10d   :  { %v267_v36 = vmul.f32 %v688_v31, %v688_v31  ;;  %v268_v37 = vmul.f32 %v691_v32, %v691_v32  ;;  %v269_v41 = vmul.f32 %v693_v33, %v693_v33  ;;  %v270_v38 = vmul.f32 %v695_v34, %v695_v34 }
 0x10e   :  { %v271_v45 = vmul.f32 %v258_v40, %v258_v40  ;;  %v272_v50 = vmul.f32 %v259_v42, %v259_v42  ;;  %v262_v52 = vsub.f32 %v196_v5, %v253_v30  ;;  %v273_v53 = vmul.f32 %v260_v44, %v260_v44 }
 0x10f   :  { %v280_v35 = vsel %vm219_vm2, %v267_v36, 0.0  ;;  %v281_v39 = vsel %vm219_vm2, %v268_v37, 0.0  ;;  %v283_v46 = vsel %vm219_vm2, %v269_v41, 0.0  ;;  %v285_v48 = vsel %vm219_vm2, %v270_v38, 0.0  ;;  %v411_v36 = vld [vmem:[%s783_s3] ss:$0 sm:$0xff] }
 0x110   :  { %v282_v43 = vadd.f32 %v281_v39, %v280_v35  ;;  %v287_v54 = vsel %vm219_vm2, %v271_v45, 0.0  ;;  %v263_v56 = vsub.f32 %v201_v9, %v253_v30  ;;  %v274_v57 = vmul.f32 %v261_v49, %v261_v49 }
 0x111   :  { %v289_v58 = vsel %vm219_vm2, %v272_v50, 0.0  ;;  %v264_v60 = vsub.f32 %v206_v12, %v253_v30  ;;  %v275_v61 = vmul.f32 %v262_v52, %v262_v52  ;;  %v291_v62 = vsel %vm219_vm2, %v273_v53, 0.0 }
 0x112   :  { %v284_v47 = vadd.f32 %v283_v46, %v282_v43  ;;  %v265_v0 = vsub.f32 %v211_v15, %v253_v30  ;;  %v276_v1 = vmul.f32 %v263_v56, %v263_v56  ;;  %v293_v2 = vsel %vm219_vm2, %v274_v57, 0.0 }
 0x113   :  { %v266_v4 = vsub.f32 %v216_v16, %v253_v30  ;;  %v277_v5 = vmul.f32 %v264_v60, %v264_v60  ;;  %v295_v6 = vsel %vm219_vm2, %v275_v61, 0.0 }
 0x114   :  { %v286_v51 = vadd.f32 %v285_v48, %v284_v47  ;;  %v278_v8 = vmul.f32 %v265_v0, %v265_v0  ;;  %v297_v9 = vsel %vm219_vm2, %v276_v1, 0.0 }
 0x115   :  { %v279_v11 = vmul.f32 %v266_v4, %v266_v4  ;;  %v299_v12 = vsel %vm219_vm2, %v277_v5, 0.0 }
 0x116   :  { %v288_v55 = vadd.f32 %v287_v54, %v286_v51  ;;  %v301_v14 = vsel %vm219_vm2, %v278_v8, 0.0 }
 0x117   :  { %v303_v17 = vsel %vm243_vm3, %v279_v11, 0.0 }
 0x118   :  { %v290_v59 = vadd.f32 %v289_v58, %v288_v55 }
 0x11a   :  { %v292_v63 = vadd.f32 %v291_v62, %v290_v59 }
 0x11c   :  { %v294_v3 = vadd.f32 %v293_v2, %v292_v63 }
 0x11e   :  { %v296_v7 = vadd.f32 %v295_v6, %v294_v3 }
 0x120   :  { %v298_v10 = vadd.f32 %v297_v9, %v296_v7 }
 0x122   :  { %v300_v13 = vadd.f32 %v299_v12, %v298_v10 }
 0x124   :  { %v302_v15 = vadd.f32 %v301_v14, %v300_v13 }
 0x126   :  { %v304_v18 = vadd.f32 %v303_v17, %v302_v15 }
 0x128   :  { %v305_v19 = vrot.slane %v304_v18, 4 }
 0x12a   :  { %v306_v16 = vadd.f32 %v305_v19, %v304_v18 }
 0x12c   :  { %v307_v20 = vrot.slane %v306_v16, 2 }
 0x12e   :  { %v308_v21 = vadd.f32 %v307_v20, %v306_v16 }
 0x130   :  { %v309_v22 = vrot.slane %v308_v21, 1 }
 0x132   :  { %v310_v23 = vadd.f32 %v309_v22, %v308_v21 }
 0x134   :  { %v311_v24 = vmul.f32 0.010204081, %v310_v23 }
 0x136   :  { %v312_v25 = vadd.f32 1e-05, %v311_v24 }
 0x138   :  { %512 = vrsqrt.f32 %v312_v25 }
 0x145   :  { %v513_v26 = vpop.eup %512 }
 0x146   :  { %v314_v27 = vmul.f32 %v513_v26, %v688_v31  ;;  %v315_v28 = vmul.f32 %v513_v26, %v691_v32  ;;  %v316_v29 = vmul.f32 %v513_v26, %v693_v33  ;;  %v317_v30 = vmul.f32 %v513_v26, %v695_v34  ;;  %v412_v33 = vld [vmem:[%s784_s4] ss:$0 sm:$0xff] }
 0x147   :  { %v318_v37 = vmul.f32 %v513_v26, %v258_v40  ;;  %v319_v41 = vmul.f32 %v513_v26, %v259_v42  ;;  %v320_v38 = vmul.f32 %v513_v26, %v260_v44  ;;  %v321_v35 = vmul.f32 %v513_v26, %v261_v49 }
 0x148   :  { %v322_v39 = vmul.f32 %v513_v26, %v262_v52  ;;  %v323_v43 = vmul.f32 %v513_v26, %v263_v56  ;;  %v324_v45 = vmul.f32 %v513_v26, %v264_v60  ;;  %v325_v46 = vmul.f32 %v513_v26, %v265_v0 }
 0x149   :  { %v326_v47 = vmul.f32 %v513_v26, %v266_v4  ;;  %v334_v31 = vmul.f32 %v411_v36, %v314_v27  ;;  %v335_v50 = vmul.f32 %v411_v36, %v315_v28  ;;  %v336_v32 = vmul.f32 %v411_v36, %v316_v29 }
 0x14a   :  { %v337_v34 = vmul.f32 %v411_v36, %v317_v30  ;;  %v338_v48 = vmul.f32 %v411_v36, %v318_v37  ;;  %v339_v51 = vmul.f32 %v411_v36, %v319_v41  ;;  %v340_v53 = vmul.f32 %v411_v36, %v320_v38 }
 0x14b   :  { %v341_v40 = vmul.f32 %v411_v36, %v321_v35  ;;  %v342_v42 = vmul.f32 %v411_v36, %v322_v39  ;;  %v343_v44 = vmul.f32 %v411_v36, %v323_v43  ;;  %v344_v49 = vmul.f32 %v411_v36, %v324_v45 }
 0x14c   :  { %v345_v52 = vmul.f32 %v411_v36, %v325_v46  ;;  %v346_v54 = vmul.f32 %v411_v36, %v326_v47  ;;  %v354_v55 = vadd.f32 %v412_v33, %v334_v31  ;;  %v355_v56 = vadd.f32 %v412_v33, %v335_v50 }
 0x14d   :  { %v356_v57 = vadd.f32 %v412_v33, %v336_v32  ;;  %v357_v58 = vadd.f32 %v412_v33, %v337_v34  ;;  %v358_v59 = vadd.f32 %v412_v33, %v338_v48  ;;  %v359_v60 = vadd.f32 %v412_v33, %v339_v51 }
 0x14e   :  { %v360_v61 = vadd.f32 %v412_v33, %v340_v53  ;;  %v361_v62 = vadd.f32 %v412_v33, %v341_v40  ;;  %v362_v63 = vadd.f32 %v412_v33, %v342_v42  ;;  %v363_v0 = vadd.f32 %v412_v33, %v343_v44 }
 0x14f   :  { %v364_v1 = vadd.f32 %v412_v33, %v344_v49  ;;  %v365_v2 = vadd.f32 %v412_v33, %v345_v52  ;;  %v366_v3 = vadd.f32 %v412_v33, %v346_v54  ;;  %v367_v4 = vmax.f32 %v354_v55, 0.0 }
 0x150   :  { %v368_v5 = vmax.f32 %v355_v56, 0.0  ;;  %v369_v6 = vmax.f32 %v356_v57, 0.0  ;;  %v370_v7 = vmax.f32 %v357_v58, 0.0  ;;  %v371_v8 = vmax.f32 %v358_v59, 0.0 }
 0x151   :  { %v372_v9 = vmax.f32 %v359_v60, 0.0  ;;  %v373_v10 = vmax.f32 %v360_v61, 0.0  ;;  %v374_v11 = vmax.f32 %v361_v62, 0.0  ;;  %v375_v12 = vmax.f32 %v362_v63, 0.0  ;;  %380 = vst.msk [vmem:[%s785_s5] sm:$0xff] %vm219_vm2, %v367_v4 }
 0x152   :  { %v376_v13 = vmax.f32 %v363_v0, 0.0  ;;  %v377_v14 = vmax.f32 %v364_v1, 0.0  ;;  %v378_v15 = vmax.f32 %v365_v2, 0.0  ;;  %v379_v17 = vmax.f32 %v366_v3, 0.0  ;;  %381 = vst.msk [vmem:[%s785_s5 + $0x8] sm:$0xff] %vm219_vm2, %v368_v5  ;;  %382 = vst.msk [vmem:[%s785_s5 + $0x10] sm:$0xff] %vm219_vm2, %v369_v6 }
 0x153   :  { %383 = vst.msk [vmem:[%s785_s5 + $0x18] sm:$0xff] %vm219_vm2, %v370_v7  ;;  %384 = vst.msk [vmem:[%s785_s5 + $0x20] sm:$0xff] %vm219_vm2, %v371_v8 }
 0x154   :  { %385 = vst.msk [vmem:[%s785_s5 + $0x28] sm:$0xff] %vm219_vm2, %v372_v9  ;;  %386 = vst.msk [vmem:[%s785_s5 + $0x30] sm:$0xff] %vm219_vm2, %v373_v10 }
 0x155   :  { %387 = vst.msk [vmem:[%s785_s5 + $0x38] sm:$0xff] %vm219_vm2, %v374_v11  ;;  %388 = vst.msk [vmem:[%s785_s5 + $0x40] sm:$0xff] %vm219_vm2, %v375_v12 }
 0x156   :  { %389 = vst.msk [vmem:[%s785_s5 + $0x48] sm:$0xff] %vm219_vm2, %v376_v13  ;;  %390 = vst.msk [vmem:[%s785_s5 + $0x50] sm:$0xff] %vm219_vm2, %v377_v14 }
 0x157   :  { %391 = vst.msk [vmem:[%s785_s5 + $0x58] sm:$0xff] %vm219_vm2, %v378_v15 }
 0x158   :  { %392 = vst.msk [vmem:[%s785_s5 + $0x60] sm:$0x3] %vm243_vm3, %v379_v17 }

// kernel: encoder_forward.5
= control target key start
LH: loop header
LB: loop body
LE: loop exit
PB: predicated region body
PF: predicated region fallthrough
CT: control target
= control target key end

     0   :  { %v1941_v1 = vmov 0.0   ;;  %vm71_vm0 = vcmask 130048   ;;  %s2705_s0 = inlined_call_operand.vmem [shape: f32[9,2,144], index: 0, kind: input, shape index: {}]   ;;  %s2706_s1 = inlined_call_operand.vmem [shape: f32[144,32], index: 1, kind: input, shape index: {}]   ;;  %s2707_s2 = inlined_call_operand.vmem [shape: f32[1,32], index: 2, kind: input, shape index: {}]   ;;  %s2708_s3 = inlined_call_operand.vmem [shape: f32[9,32,128], index: 3, kind: input, shape index: {}]   ;;  %s2709_s4 = inlined_call_operand.vmem [shape: f32[1,128], index: 4, kind: input, shape index: {}]   ;;  %s2710_s5 = inlined_call_operand.vmem [shape: f32[128,16], index: 5, kind: input, shape index: {}]   ;;  %s2711_s6 = inlined_call_operand.vmem [shape: f32[1,16], index: 6, kind: input, shape index: {}]   ;;  %s2712_s7 = inlined_call_operand.hbm [shape: f32[2,16], index: 7, kind: output, shape index: {}]  }
   0x1   :  { %v1987_v0 = vld [vmem:[%s2706_s1 + $0x78] sm:$0xff]  ;;  %74 = vmatprep.subr.mxu0 %v1941_v1  ;;  %v1993_v2 = vld [vmem:[%s2706_s1 + $0x70] sm:$0xff]  ;;  %1778 = vmatprep.subr.mxu1 %v1941_v1  ;;  %v2001_v3 = vld [vmem:[%s2706_s1 + $0x68] sm:$0xff] }
   0x2   :  { %75 = vmatpush1.msra.mxu0 %v1987_v0  ;;  %v2008_v4 = vld [vmem:[%s2706_s1 + $0x60] sm:$0xff]  ;;  %v148_v6 = vld [vmem:[%s2708_s3 + $0x18] sm:$0xff]  ;;  %v147_v9 = vld [vmem:[%s2708_s3 + $0x10] sm:$0xff] }
   0x3   :  { %76 = vmatprep.subr.mxu0 %v1941_v1  ;;  %v1648_v5 = vld.sshfl [vmem:[%s2705_s0] sm:$0x33 pattern:$0x76325410]  ;;  %v2021_v7 = vld [vmem:[%s2706_s1 + $0x58] sm:$0xff]  ;;  %1779 = vmatpush3.msra.mxu1 %v148_v6 }
   0x4   :  { %77 = vmatpush1.msra.mxu0 %v1993_v2  ;;  %v69_v8 = vcombine.high %v1648_v5, %v1648_v5 }
   0x5   :  { %78 = vmatprep.subr.mxu0 %v1941_v1 }
   0x6   :  { %79 = vmatpush1.msra.mxu0 %v2001_v3 }
   0x7   :  { %80 = vmatprep.subr.mxu0 %v1941_v1 }
   0x8   :  { %12 = vsyncpa [#allocation3], 0  ;;  %81 = vmatpush1.msra.mxu0 %v2008_v4  ;;  %1780 = vmatprep.subr.mxu1 %v1941_v1  ;;  %v2032_v10 = vld [vmem:[%s2706_s1 + $0x50] sm:$0xff]  ;;  %v2040_v11 = vld [vmem:[%s2706_s1 + $0x48] sm:$0xff]  ;;  %vm1942_vm1 = vmmov 0   ;;  %vm149_vm2 = vcmask 261120  }
   0x9   :  { %82 = vmatprep.subr.mxu0 %v1941_v1  ;;  %1649 = vmatprep.mubr.msk.f32.mxu0 %vm71_vm0, %v69_v8  ;;  %v2048_v12 = vld [vmem:[%s2706_s1 + $0x40] sm:$0xff]  ;;  %v2055_v13 = vld [vmem:[%s2706_s1 + $0x38] sm:$0xff]  ;;  %v2062_v14 = vld [vmem:[%s2706_s1 + $0x30] sm:$0xff]  ;;  %s1943_s20 = smov [#allocation2]   ;;  %vm1630_vm3 = vcmask 123904  }
   0xa   :  { %83 = vmatpush1.msra.mxu0 %v2021_v7  ;;  %1781 = vmatpush3.msra.mxu1 %v147_v9  ;;  %v2069_v15 = vld [vmem:[%s2706_s1 + $0x28] sm:$0xff]  ;;  %v2076_v16 = vld [vmem:[%s2706_s1 + $0x20] sm:$0xff]  ;;  %v2083_v17 = vld [vmem:[%s2706_s1 + $0x18] sm:$0xff]  ;;  %s1638_s21 = sshll.u32 %s1943_s20, 4  ;;  %s1639_s21 = int_to_ptr.vmem [resolvable:$true] %s1638_s21 }
   0xb   :  { %84 = vmatprep.subr.mxu0 %v1941_v1  ;;  %1782 = vmatprep.subr.mxu1 %v1941_v1  ;;  %v2090_v18 = vld [vmem:[%s2706_s1 + $0x10] sm:$0xff]  ;;  %v2097_v19 = vld [vmem:[%s2706_s1 + $0x8] sm:$0xff]  ;;  %v2104_v20 = vld [vmem:[%s2706_s1] sm:$0xff]  ;;  %s1919_s22 = scalar_lea.vmem %s1639_s21, 32  ;;  %p1924_p1 = scmp.lt.s32.totalorder %s1639_s21, %s1639_s21 }
   0xc   :  { %85 = vmatpush1.msra.mxu0 %v2032_v10  ;;  %v2111_v21 = vld [vmem:[%s2706_s1 + $0x88] sm:$0xff]  ;;  %v2118_v22 = vld [vmem:[%s2706_s1 + $0x80] sm:$0xff]  ;;  %1786 = vmatprep.mubr.msk.f32.mxu1 %vm1942_vm1, %v1941_v1  ;;  %v1657_v32 = vld [vmem:[%s2708_s3 + $0x38] sm:$0xff]  ;;  %p1920_p0 = scmp.ne.s32.totalorder %s1639_s21, %s1919_s22  ;;  %p1925_p2 = scmp.lt.s32.totalorder %s1919_s22, %s1919_s22 }
   0xd   :  { %86 = vmatprep.subr.mxu0 %v1941_v1  ;;  %v146_v23 = vld [vmem:[%s2708_s3 + $0x8] sm:$0xff]  ;;  %v145_v24 = vld [vmem:[%s2708_s3] sm:$0xff]  ;;  %v1656_v33 = vld [vmem:[%s2708_s3 + $0x30] sm:$0xff] }
   0xe   :  { %87 = vmatpush1.msra.mxu0 %v2040_v11  ;;  %1783 = vmatpush3.msra.mxu1 %v146_v23  ;;  %v2139_v25 = vld [vmem:[%s2707_s2] ss:$0 sm:$0xff]  ;;  %v1652_v26 = vld.sshfl [vmem:[%s2705_s0 + $0x4] sm:$0x33 pattern:$0x76325410]  ;;  %p1926_p3 = por %p1925_p2, %p1924_p1 }
   0xf   :  { %88 = vmatprep.subr.mxu0 %v1941_v1  ;;  %1784 = vmatprep.subr.mxu1 %v1941_v1  ;;  %v234_v30 = vcombine.high %v1652_v26, %v1652_v26  ;;  %v1655_v34 = vld [vmem:[%s2708_s3 + $0x28] sm:$0xff]  ;;  %v1654_v35 = vld [vmem:[%s2708_s3 + $0x20] sm:$0xff]  ;;  %v1665_v44 = vld [vmem:[%s2708_s3 + $0x58] sm:$0xff] }
  0x10   :  { %89 = vmatpush1.msra.mxu0 %v2048_v12  ;;  %1785 = vmatpush3.msra.mxu1 %v145_v24  ;;  %v1660_v38 = vld.sshfl [vmem:[%s2705_s0 + $0x8] sm:$0x33 pattern:$0x76325410]  ;;  %v1664_v45 = vld [vmem:[%s2708_s3 + $0x50] sm:$0xff]  ;;  %v1662_v47 = vld [vmem:[%s2708_s3 + $0x40] sm:$0xff]  ;;  %p1927_p4 = pnand %p1926_p3, %p1920_p0 }
  0x11   :  { %90 = vmatprep.subr.mxu0 %v1941_v1  ;;  %238 = vmatprep.subr.mxu1 %v1941_v1  ;;  %v398_v42 = vcombine.high %v1660_v38, %v1660_v38  ;;  %v1663_v46 = vld [vmem:[%s2708_s3 + $0x48] sm:$0xff]  ;;  %v1646_v48 = vld [vmem:[%s2709_s4] ss:$0 sm:$0xff]  ;;  %v1673_v59 = vld [vmem:[%s2708_s3 + $0x78] sm:$0xff] }
  0x12   :  { %91 = vmatpush1.msra.mxu0 %v2055_v13  ;;  %v1668_v53 = vld.sshfl [vmem:[%s2705_s0 + $0xc] sm:$0x33 pattern:$0x76325410]  ;;  %v1672_v60 = vld [vmem:[%s2708_s3 + $0x70] sm:$0xff]  ;;  %v1670_v62 = vld [vmem:[%s2708_s3 + $0x60] sm:$0xff] }
  0x13   :  { %92 = vmatprep.subr.mxu0 %v1941_v1  ;;  %v562_v57 = vcombine.high %v1668_v53, %v1668_v53  ;;  %v1671_v61 = vld [vmem:[%s2708_s3 + $0x68] sm:$0xff]  ;;  %v1676_v8 = vld.sshfl [vmem:[%s2705_s0 + $0x10] sm:$0x33 pattern:$0x76325410] }
  0x14   :  { %93 = vmatpush1.msra.mxu0 %v2062_v14 }
  0x15   :  { %94 = vmatprep.subr.mxu0 %v1941_v1 }
  0x16   :  { %95 = vmatpush1.msra.mxu0 %v2069_v15 }
  0x17   :  { %96 = vmatprep.subr.mxu0 %v1941_v1 }
  0x18   :  { %97 = vmatpush1.msra.mxu0 %v2076_v16 }
  0x19   :  { %98 = vmatprep.subr.mxu0 %v1941_v1 }
  0x1a   :  { %99 = vmatpush1.msra.mxu0 %v2083_v17 }
  0x1b   :  { %100 = vmatprep.subr.mxu0 %v1941_v1 }
  0x1c   :  { %101 = vmatpush1.msra.mxu0 %v2090_v18 }
  0x1d   :  { %102 = vmatprep.subr.mxu0 %v1941_v1 }
  0x1e   :  { %103 = vmatpush1.msra.mxu0 %v2097_v19 }
  0x1f   :  { %104 = vmatprep.subr.mxu0 %v1941_v1 }
  0x20   :  { %105 = vmatpush1.msra.mxu0 %v2104_v20 }
  0x21   :  { %134 = vmatprep.subr.mxu0 %v1941_v1 }
  0x22   :  { %135 = vmatpush2.msra.mxu0 %v2111_v21 }
  0x23   :  { %136 = vmatprep.subr.mxu0 %v1941_v1 }
  0x24   :  { %137 = vmatpush2.msra.mxu0 %v2118_v22 }
  0x25   :  { %139 = vmatmul.mubr.f32.vlgmr.msra.gmra.mxu0 %v1648_v5  ;;  %1789 = vmatprep.subr.mxu0 %v1941_v1 }
  0x26   :  { %1797 = vmatprep.mubr.msk.f32.mxu0 %vm1942_vm1, %v1941_v1  ;;  %1790 = vmatpush3.msra.mxu0 %v1657_v32 }
  0x27   :  { %1791 = vmatprep.subr.mxu0 %v1941_v1 }
  0x28   :  { %1792 = vmatpush3.msra.mxu0 %v1656_v33 }
  0x29   :  { %1793 = vmatprep.subr.mxu0 %v1941_v1 }
  0x2a   :  { %1794 = vmatpush3.msra.mxu0 %v1655_v34 }
  0x2b   :  { %1795 = vmatprep.subr.mxu0 %v1941_v1 }
  0x2c   :  { %1796 = vmatpush3.msra.mxu0 %v1654_v35  ;;  %v1684_v35 = vld.sshfl [vmem:[%s2705_s0 + $0x14] sm:$0x33 pattern:$0x76325410] }
  0x2d   :  { %402 = vmatprep.subr.mxu0 %v1941_v1 }
  0xe5   :  { %v140_v27 = vpop.f32.mrf.mxu0 }
  0xe6   :  { %v141_v28 = vadd.f32 %v2139_v25, %v140_v27 }
  0xe7   :  { %v142_v29 = vpop.f32.mrf.mxu0 }
  0xe8   :  { %v144_v31 = vmax.f32 %v141_v28, 0.0  ;;  %v1681_v28 = vld [vmem:[%s2708_s3 + $0x98] sm:$0xff]  ;;  %v1680_v29 = vld [vmem:[%s2708_s3 + $0x90] sm:$0xff] }
  0xea   :  { %1787 = vmatmul.mubr.msk.f32.vlgmr.msra.gmra.mxu1 %vm149_vm2, %v144_v31  ;;  %v1678_v31 = vld [vmem:[%s2708_s3 + $0x80] sm:$0xff] }
  0xeb   :  { %239 = vmatpush1.msra.mxu1 %v1987_v0  ;;  %1653 = vmatprep.mubr.msk.f32.mxu1 %vm71_vm0, %v234_v30  ;;  %v1679_v30 = vld [vmem:[%s2708_s3 + $0x88] sm:$0xff] }
  0xec   :  { %240 = vmatprep.subr.mxu1 %v1941_v1 }
  0xed   :  { %241 = vmatpush1.msra.mxu1 %v1993_v2 }
  0xee   :  { %242 = vmatprep.subr.mxu1 %v1941_v1 }
  0xef   :  { %243 = vmatpush1.msra.mxu1 %v2001_v3 }
  0xf0   :  { %244 = vmatprep.subr.mxu1 %v1941_v1 }
  0xf1   :  { %245 = vmatpush1.msra.mxu1 %v2008_v4 }
  0xf2   :  { %246 = vmatprep.subr.mxu1 %v1941_v1 }
  0xf3   :  { %247 = vmatpush1.msra.mxu1 %v2021_v7 }
  0xf4   :  { %248 = vmatprep.subr.mxu1 %v1941_v1 }
  0xf5   :  { %249 = vmatpush1.msra.mxu1 %v2032_v10 }
  0xf6   :  { %250 = vmatprep.subr.mxu1 %v1941_v1 }
  0xf7   :  { %251 = vmatpush1.msra.mxu1 %v2040_v11 }
  0xf8   :  { %252 = vmatprep.subr.mxu1 %v1941_v1 }
  0xf9   :  { %253 = vmatpush1.msra.mxu1 %v2048_v12 }
  0xfa   :  { %254 = vmatprep.subr.mxu1 %v1941_v1 }
  0xfb   :  { %255 = vmatpush1.msra.mxu1 %v2055_v13 }
  0xfc   :  { %256 = vmatprep.subr.mxu1 %v1941_v1 }
  0xfd   :  { %257 = vmatpush1.msra.mxu1 %v2062_v14 }
  0xfe   :  { %258 = vmatprep.subr.mxu1 %v1941_v1 }
  0xff   :  { %259 = vmatpush1.msra.mxu1 %v2069_v15 }
 0x100   :  { %260 = vmatprep.subr.mxu1 %v1941_v1 }
 0x101   :  { %261 = vmatpush1.msra.mxu1 %v2076_v16 }
 0x102   :  { %262 = vmatprep.subr.mxu1 %v1941_v1 }
 0x103   :  { %263 = vmatpush1.msra.mxu1 %v2083_v17 }
 0x104   :  { %264 = vmatprep.subr.mxu1 %v1941_v1 }
 0x105   :  { %265 = vmatpush1.msra.mxu1 %v2090_v18 }
 0x106   :  { %266 = vmatprep.subr.mxu1 %v1941_v1 }
 0x107   :  { %267 = vmatpush1.msra.mxu1 %v2097_v19 }
 0x108   :  { %268 = vmatprep.subr.mxu1 %v1941_v1 }
 0x109   :  { %269 = vmatpush1.msra.mxu1 %v2104_v20 }
 0x10a   :  { %298 = vmatprep.subr.mxu1 %v1941_v1 }
 0x10b   :  { %299 = vmatpush2.msra.mxu1 %v2111_v21 }
 0x10c   :  { %300 = vmatprep.subr.mxu1 %v1941_v1 }
 0x10d   :  { %301 = vmatpush2.msra.mxu1 %v2118_v22 }
 0x10e   :  { %303 = vmatmul.mubr.f32.vlgmr.msra.gmra.mxu1 %v1652_v26  ;;  %1800 = vmatprep.subr.mxu1 %v1941_v1  ;;  %v726_v26 = vcombine.high %v1676_v8, %v1676_v8 }
 0x10f   :  { %1808 = vmatprep.mubr.msk.f32.mxu1 %vm1942_vm1, %v1941_v1  ;;  %1801 = vmatpush3.msra.mxu1 %v1665_v44  ;;  %v1686_v44 = vld [vmem:[%s2708_s3 + $0xa0] sm:$0xff] }
 0x110   :  { %1802 = vmatprep.subr.mxu1 %v1941_v1 }
 0x111   :  { %1803 = vmatpush3.msra.mxu1 %v1664_v45 }
 0x112   :  { %1804 = vmatprep.subr.mxu1 %v1941_v1 }
 0x113   :  { %1805 = vmatpush3.msra.mxu1 %v1663_v46 }
 0x114   :  { %1806 = vmatprep.subr.mxu1 %v1941_v1 }
 0x115   :  { %1807 = vmatpush3.msra.mxu1 %v1662_v47 }
 0x116   :  { %566 = vmatprep.subr.mxu1 %v1941_v1 }
 0x1aa   :  { %v219_v36 = vpop.f32.mrf.mxu1 }
 0x1ab   :  { %v223_v49 = vadd.f32 %v1646_v48, %v219_v36  ;;  %v1692_v48 = vld.sshfl [vmem:[%s2705_s0 + $0x18] sm:$0x33 pattern:$0x76325410] }
 0x1ac   :  { %v1788_v37 = vpop.f32.mrf.mxu1 }
 0x1ce   :  { %v304_v39 = vpop.f32.mrf.mxu1 }
 0x1cf   :  { %v305_v40 = vadd.f32 %v2139_v25, %v304_v39  ;;  %v890_v39 = vcombine.high %v1684_v35, %v1684_v35 }
 0x1d0   :  { %v306_v41 = vpop.f32.mrf.mxu1 }
 0x1d1   :  { %v308_v43 = vmax.f32 %v305_v40, 0.0  ;;  %v1689_v41 = vld [vmem:[%s2708_s3 + $0xb8] sm:$0xff] }
 0x1d3   :  { %1798 = vmatmul.mubr.msk.f32.vlgmr.msra.gmra.mxu0 %vm149_vm2, %v308_v43  ;;  %v1687_v43 = vld [vmem:[%s2708_s3 + $0xa8] sm:$0xff] }
 0x1d4   :  { %403 = vmatpush1.msra.mxu0 %v1987_v0  ;;  %1661 = vmatprep.mubr.msk.f32.mxu0 %vm71_vm0, %v398_v42  ;;  %v1688_v42 = vld [vmem:[%s2708_s3 + $0xb0] sm:$0xff] }
 0x1d5   :  { %404 = vmatprep.subr.mxu0 %v1941_v1 }
 0x1d6   :  { %405 = vmatpush1.msra.mxu0 %v1993_v2 }
 0x1d7   :  { %406 = vmatprep.subr.mxu0 %v1941_v1 }
 0x1d8   :  { %407 = vmatpush1.msra.mxu0 %v2001_v3 }
 0x1d9   :  { %408 = vmatprep.subr.mxu0 %v1941_v1 }
 0x1da   :  { %409 = vmatpush1.msra.mxu0 %v2008_v4 }
 0x1db   :  { %410 = vmatprep.subr.mxu0 %v1941_v1 }
 0x1dc   :  { %411 = vmatpush1.msra.mxu0 %v2021_v7 }
 0x1dd   :  { %412 = vmatprep.subr.mxu0 %v1941_v1 }
 0x1de   :  { %413 = vmatpush1.msra.mxu0 %v2032_v10 }
 0x1df   :  { %414 = vmatprep.subr.mxu0 %v1941_v1 }
 0x1e0   :  { %415 = vmatpush1.msra.mxu0 %v2040_v11 }
 0x1e1   :  { %416 = vmatprep.subr.mxu0 %v1941_v1 }
 0x1e2   :  { %417 = vmatpush1.msra.mxu0 %v2048_v12 }
 0x1e3   :  { %418 = vmatprep.subr.mxu0 %v1941_v1 }
 0x1e4   :  { %419 = vmatpush1.msra.mxu0 %v2055_v13 }
 0x1e5   :  { %420 = vmatprep.subr.mxu0 %v1941_v1 }
 0x1e6   :  { %421 = vmatpush1.msra.mxu0 %v2062_v14 }
 0x1e7   :  { %422 = vmatprep.subr.mxu0 %v1941_v1 }
 0x1e8   :  { %423 = vmatpush1.msra.mxu0 %v2069_v15 }
 0x1e9   :  { %424 = vmatprep.subr.mxu0 %v1941_v1 }
 0x1ea   :  { %425 = vmatpush1.msra.mxu0 %v2076_v16 }
 0x1eb   :  { %426 = vmatprep.subr.mxu0 %v1941_v1 }
 0x1ec   :  { %427 = vmatpush1.msra.mxu0 %v2083_v17 }
 0x1ed   :  { %428 = vmatprep.subr.mxu0 %v1941_v1 }
 0x1ee   :  { %429 = vmatpush1.msra.mxu0 %v2090_v18 }
 0x1ef   :  { %430 = vmatprep.subr.mxu0 %v1941_v1 }
 0x1f0   :  { %431 = vmatpush1.msra.mxu0 %v2097_v19 }
 0x1f1   :  { %432 = vmatprep.subr.mxu0 %v1941_v1 }
 0x1f2   :  { %433 = vmatpush1.msra.mxu0 %v2104_v20 }
 0x1f3   :  { %462 = vmatprep.subr.mxu0 %v1941_v1 }
 0x1f4   :  { %463 = vmatpush2.msra.mxu0 %v2111_v21 }
 0x1f5   :  { %464 = vmatprep.subr.mxu0 %v1941_v1 }
 0x1f6   :  { %465 = vmatpush2.msra.mxu0 %v2118_v22 }
 0x1f7   :  { %467 = vmatmul.mubr.f32.vlgmr.msra.gmra.mxu0 %v1660_v38  ;;  %1811 = vmatprep.subr.mxu0 %v1941_v1 }
 0x1f8   :  { %1819 = vmatprep.mubr.msk.f32.mxu0 %vm1942_vm1, %v1941_v1  ;;  %1812 = vmatpush3.msra.mxu0 %v1673_v59 }
 0x1f9   :  { %1813 = vmatprep.subr.mxu0 %v1941_v1 }
 0x1fa   :  { %1814 = vmatpush3.msra.mxu0 %v1672_v60 }
 0x1fb   :  { %1815 = vmatprep.subr.mxu0 %v1941_v1 }
 0x1fc   :  { %1816 = vmatpush3.msra.mxu0 %v1671_v61  ;;  %v1700_v61 = vld.sshfl [vmem:[%s2705_s0 + $0x1c] sm:$0x33 pattern:$0x76325410] }
 0x1fd   :  { %1817 = vmatprep.subr.mxu0 %v1941_v1 }
 0x1fe   :  { %1818 = vmatpush3.msra.mxu0 %v1670_v62 }
 0x1ff   :  { %730 = vmatprep.subr.mxu0 %v1941_v1 }
 0x293   :  { %v383_v50 = vpop.f32.mrf.mxu0 }
 0x294   :  { %v387_v51 = vadd.f32 %v383_v50, %v223_v49 }
 0x295   :  { %v1799_v52 = vpop.f32.mrf.mxu0 }
 0x296   :  { %v1054_v52 = vcombine.high %v1692_v48, %v1692_v48 }
 0x2b7   :  { %v468_v54 = vpop.f32.mrf.mxu0 }
 0x2b8   :  { %v469_v55 = vadd.f32 %v2139_v25, %v468_v54  ;;  %v1697_v54 = vld [vmem:[%s2708_s3 + $0xd8] sm:$0xff] }
 0x2b9   :  { %v470_v56 = vpop.f32.mrf.mxu0 }
 0x2ba   :  { %v472_v58 = vmax.f32 %v469_v55, 0.0  ;;  %v1696_v55 = vld [vmem:[%s2708_s3 + $0xd0] sm:$0xff]  ;;  %v1695_v56 = vld [vmem:[%s2708_s3 + $0xc8] sm:$0xff] }
 0x2bc   :  { %1809 = vmatmul.mubr.msk.f32.vlgmr.msra.gmra.mxu1 %vm149_vm2, %v472_v58 }
 0x2bd   :  { %567 = vmatpush1.msra.mxu1 %v1987_v0  ;;  %1669 = vmatprep.mubr.msk.f32.mxu1 %vm71_vm0, %v562_v57  ;;  %v1694_v57 = vld [vmem:[%s2708_s3 + $0xc0] sm:$0xff] }
 0x2be   :  { %568 = vmatprep.subr.mxu1 %v1941_v1 }
 0x2bf   :  { %569 = vmatpush1.msra.mxu1 %v1993_v2 }
 0x2c0   :  { %570 = vmatprep.subr.mxu1 %v1941_v1 }
 0x2c1   :  { %571 = vmatpush1.msra.mxu1 %v2001_v3 }
 0x2c2   :  { %572 = vmatprep.subr.mxu1 %v1941_v1 }
 0x2c3   :  { %573 = vmatpush1.msra.mxu1 %v2008_v4 }
 0x2c4   :  { %574 = vmatprep.subr.mxu1 %v1941_v1 }
 0x2c5   :  { %575 = vmatpush1.msra.mxu1 %v2021_v7 }
 0x2c6   :  { %576 = vmatprep.subr.mxu1 %v1941_v1 }
 0x2c7   :  { %577 = vmatpush1.msra.mxu1 %v2032_v10 }
 0x2c8   :  { %578 = vmatprep.subr.mxu1 %v1941_v1 }
 0x2c9   :  { %579 = vmatpush1.msra.mxu1 %v2040_v11 }
 0x2ca   :  { %580 = vmatprep.subr.mxu1 %v1941_v1 }
 0x2cb   :  { %581 = vmatpush1.msra.mxu1 %v2048_v12 }
 0x2cc   :  { %582 = vmatprep.subr.mxu1 %v1941_v1 }
 0x2cd   :  { %583 = vmatpush1.msra.mxu1 %v2055_v13 }
 0x2ce   :  { %584 = vmatprep.subr.mxu1 %v1941_v1 }
 0x2cf   :  { %585 = vmatpush1.msra.mxu1 %v2062_v14 }
 0x2d0   :  { %586 = vmatprep.subr.mxu1 %v1941_v1 }
 0x2d1   :  { %587 = vmatpush1.msra.mxu1 %v2069_v15 }
 0x2d2   :  { %588 = vmatprep.subr.mxu1 %v1941_v1 }
 0x2d3   :  { %589 = vmatpush1.msra.mxu1 %v2076_v16 }
 0x2d4   :  { %590 = vmatprep.subr.mxu1 %v1941_v1 }
 0x2d5   :  { %591 = vmatpush1.msra.mxu1 %v2083_v17 }
 0x2d6   :  { %592 = vmatprep.subr.mxu1 %v1941_v1 }
 0x2d7   :  { %593 = vmatpush1.msra.mxu1 %v2090_v18 }
 0x2d8   :  { %594 = vmatprep.subr.mxu1 %v1941_v1 }
 0x2d9   :  { %595 = vmatpush1.msra.mxu1 %v2097_v19 }
 0x2da   :  { %596 = vmatprep.subr.mxu1 %v1941_v1 }
 0x2db   :  { %597 = vmatpush1.msra.mxu1 %v2104_v20 }
 0x2dc   :  { %626 = vmatprep.subr.mxu1 %v1941_v1 }
 0x2dd   :  { %627 = vmatpush2.msra.mxu1 %v2111_v21 }
 0x2de   :  { %628 = vmatprep.subr.mxu1 %v1941_v1 }
 0x2df   :  { %629 = vmatpush2.msra.mxu1 %v2118_v22 }
 0x2e0   :  { %631 = vmatmul.mubr.f32.vlgmr.msra.gmra.mxu1 %v1668_v53  ;;  %1822 = vmatprep.subr.mxu1 %v1941_v1 }
 0x2e1   :  { %1830 = vmatprep.mubr.msk.f32.mxu1 %vm1942_vm1, %v1941_v1  ;;  %1823 = vmatpush3.msra.mxu1 %v1681_v28 }
 0x2e2   :  { %1824 = vmatprep.subr.mxu1 %v1941_v1 }
 0x2e3   :  { %1825 = vmatpush3.msra.mxu1 %v1680_v29 }
 0x2e4   :  { %1826 = vmatprep.subr.mxu1 %v1941_v1 }
 0x2e5   :  { %1827 = vmatpush3.msra.mxu1 %v1679_v30 }
 0x2e6   :  { %1828 = vmatprep.subr.mxu1 %v1941_v1 }
 0x2e7   :  { %1829 = vmatpush3.msra.mxu1 %v1678_v31 }
 0x2e8   :  { %894 = vmatprep.subr.mxu1 %v1941_v1 }
 0x37c   :  { %v547_v63 = vpop.f32.mrf.mxu1 }
 0x37d   :  { %v551_v5 = vadd.f32 %v547_v63, %v387_v51 }
 0x37e   :  { %v1810_v6 = vpop.f32.mrf.mxu1 }
 0x37f   :  { %v1218_v6 = vcombine.high %v1700_v61, %v1700_v61 }
 0x3a0   :  { %v632_v9 = vpop.f32.mrf.mxu1 }
 0x3a1   :  { %v633_v23 = vadd.f32 %v2139_v25, %v632_v9 }
 0x3a2   :  { %v634_v24 = vpop.f32.mrf.mxu1 }
 0x3a3   :  { %v636_v27 = vmax.f32 %v633_v23, 0.0 }
 0x3a5   :  { %1820 = vmatmul.mubr.msk.f32.vlgmr.msra.gmra.mxu0 %vm149_vm2, %v636_v27 }
 0x3a6   :  { %731 = vmatpush1.msra.mxu0 %v1987_v0  ;;  %1677 = vmatprep.mubr.msk.f32.mxu0 %vm71_vm0, %v726_v26  ;;  %v1708_v26 = vld.sshfl [vmem:[%s2705_s0 + $0x20] sm:$0x33 pattern:$0x76325410] }
 0x3a7   :  { %732 = vmatprep.subr.mxu0 %v1941_v1  ;;  %v1382_v30 = vcombine.high %v1708_v26, %v1708_v26 }
 0x3a8   :  { %733 = vmatpush1.msra.mxu0 %v1993_v2 }
 0x3a9   :  { %734 = vmatprep.subr.mxu0 %v1941_v1 }
 0x3aa   :  { %735 = vmatpush1.msra.mxu0 %v2001_v3 }
 0x3ab   :  { %736 = vmatprep.subr.mxu0 %v1941_v1 }
 0x3ac   :  { %737 = vmatpush1.msra.mxu0 %v2008_v4 }
 0x3ad   :  { %738 = vmatprep.subr.mxu0 %v1941_v1 }
 0x3ae   :  { %739 = vmatpush1.msra.mxu0 %v2021_v7 }
 0x3af   :  { %740 = vmatprep.subr.mxu0 %v1941_v1 }
 0x3b0   :  { %741 = vmatpush1.msra.mxu0 %v2032_v10 }
 0x3b1   :  { %742 = vmatprep.subr.mxu0 %v1941_v1 }
 0x3b2   :  { %743 = vmatpush1.msra.mxu0 %v2040_v11 }
 0x3b3   :  { %744 = vmatprep.subr.mxu0 %v1941_v1 }
 0x3b4   :  { %745 = vmatpush1.msra.mxu0 %v2048_v12 }
 0x3b5   :  { %746 = vmatprep.subr.mxu0 %v1941_v1 }
 0x3b6   :  { %747 = vmatpush1.msra.mxu0 %v2055_v13 }
 0x3b7   :  { %748 = vmatprep.subr.mxu0 %v1941_v1 }
 0x3b8   :  { %749 = vmatpush1.msra.mxu0 %v2062_v14 }
 0x3b9   :  { %750 = vmatprep.subr.mxu0 %v1941_v1 }
 0x3ba   :  { %751 = vmatpush1.msra.mxu0 %v2069_v15 }
 0x3bb   :  { %752 = vmatprep.subr.mxu0 %v1941_v1 }
 0x3bc   :  { %753 = vmatpush1.msra.mxu0 %v2076_v16 }
 0x3bd   :  { %754 = vmatprep.subr.mxu0 %v1941_v1 }
 0x3be   :  { %755 = vmatpush1.msra.mxu0 %v2083_v17 }
 0x3bf   :  { %756 = vmatprep.subr.mxu0 %v1941_v1 }
 0x3c0   :  { %757 = vmatpush1.msra.mxu0 %v2090_v18 }
 0x3c1   :  { %758 = vmatprep.subr.mxu0 %v1941_v1 }
 0x3c2   :  { %759 = vmatpush1.msra.mxu0 %v2097_v19 }
 0x3c3   :  { %760 = vmatprep.subr.mxu0 %v1941_v1 }
 0x3c4   :  { %761 = vmatpush1.msra.mxu0 %v2104_v20 }
 0x3c5   :  { %790 = vmatprep.subr.mxu0 %v1941_v1 }
 0x3c6   :  { %791 = vmatpush2.msra.mxu0 %v2111_v21 }
 0x3c7   :  { %792 = vmatprep.subr.mxu0 %v1941_v1 }
 0x3c8   :  { %793 = vmatpush2.msra.mxu0 %v2118_v22 }
 0x3c9   :  { %795 = vmatmul.mubr.f32.vlgmr.msra.gmra.mxu0 %v1676_v8  ;;  %1833 = vmatprep.subr.mxu0 %v1941_v1 }
 0x3ca   :  { %1841 = vmatprep.mubr.msk.f32.mxu0 %vm1942_vm1, %v1941_v1  ;;  %1834 = vmatpush3.msra.mxu0 %v1689_v41  ;;  %v1543_v41 = vld [vmem:[%s2710_s5 + $0x30] sm:$0xff] }
 0x3cb   :  { %1835 = vmatprep.subr.mxu0 %v1941_v1 }
 0x3cc   :  { %1836 = vmatpush3.msra.mxu0 %v1688_v42  ;;  %v1542_v42 = vld [vmem:[%s2710_s5 + $0x28] sm:$0xff] }
 0x3cd   :  { %1837 = vmatprep.subr.mxu0 %v1941_v1 }
 0x3ce   :  { %1838 = vmatpush3.msra.mxu0 %v1687_v43  ;;  %v1541_v43 = vld [vmem:[%s2710_s5 + $0x20] sm:$0xff] }
 0x3cf   :  { %1839 = vmatprep.subr.mxu0 %v1941_v1 }
 0x3d0   :  { %1840 = vmatpush3.msra.mxu0 %v1686_v44  ;;  %v1540_v44 = vld [vmem:[%s2710_s5 + $0x18] sm:$0xff] }
 0x3d1   :  { %1058 = vmatprep.subr.mxu0 %v1941_v1 }
 0x465   :  { %v711_v32 = vpop.f32.mrf.mxu0 }
 0x466   :  { %v715_v33 = vadd.f32 %v711_v32, %v551_v5  ;;  %v1915_v32 = vld [vmem:[%s2706_s1 + $0x78] sm:$0xff] }
 0x467   :  { %v1821_v34 = vpop.f32.mrf.mxu0 }
 0x468   :  { %v1917_v34 = vld [vmem:[%s2706_s1 + $0x68] sm:$0xff] }
 0x489   :  { %v796_v36 = vpop.f32.mrf.mxu0 }
 0x48a   :  { %v797_v37 = vadd.f32 %v2139_v25, %v796_v36  ;;  %v1548_v36 = vld [vmem:[%s2710_s5 + $0x58] sm:$0xff] }
 0x48b   :  { %v798_v38 = vpop.f32.mrf.mxu0 }
 0x48c   :  { %v800_v40 = vmax.f32 %v797_v37, 0.0  ;;  %v1547_v37 = vld [vmem:[%s2710_s5 + $0x50] sm:$0xff]  ;;  %v1546_v38 = vld [vmem:[%s2710_s5 + $0x48] sm:$0xff] }
 0x48e   :  { %1831 = vmatmul.mubr.msk.f32.vlgmr.msra.gmra.mxu1 %vm149_vm2, %v800_v40  ;;  %v1544_v40 = vld [vmem:[%s2710_s5 + $0x38] sm:$0xff] }
 0x48f   :  { %895 = vmatpush1.msra.mxu1 %v1987_v0  ;;  %1685 = vmatprep.mubr.msk.f32.mxu1 %vm71_vm0, %v890_v39  ;;  %v1545_v39 = vld [vmem:[%s2710_s5 + $0x40] sm:$0xff] }
 0x490   :  { %896 = vmatprep.subr.mxu1 %v1941_v1 }
 0x491   :  { %897 = vmatpush1.msra.mxu1 %v1993_v2 }
 0x492   :  { %898 = vmatprep.subr.mxu1 %v1941_v1 }
 0x493   :  { %899 = vmatpush1.msra.mxu1 %v2001_v3 }
 0x494   :  { %900 = vmatprep.subr.mxu1 %v1941_v1 }
 0x495   :  { %901 = vmatpush1.msra.mxu1 %v2008_v4 }
 0x496   :  { %902 = vmatprep.subr.mxu1 %v1941_v1 }
 0x497   :  { %903 = vmatpush1.msra.mxu1 %v2021_v7 }
 0x498   :  { %904 = vmatprep.subr.mxu1 %v1941_v1 }
 0x499   :  { %905 = vmatpush1.msra.mxu1 %v2032_v10 }
 0x49a   :  { %906 = vmatprep.subr.mxu1 %v1941_v1 }
 0x49b   :  { %907 = vmatpush1.msra.mxu1 %v2040_v11 }
 0x49c   :  { %908 = vmatprep.subr.mxu1 %v1941_v1 }
 0x49d   :  { %909 = vmatpush1.msra.mxu1 %v2048_v12 }
 0x49e   :  { %910 = vmatprep.subr.mxu1 %v1941_v1 }
 0x49f   :  { %911 = vmatpush1.msra.mxu1 %v2055_v13 }
 0x4a0   :  { %912 = vmatprep.subr.mxu1 %v1941_v1 }
 0x4a1   :  { %913 = vmatpush1.msra.mxu1 %v2062_v14 }
 0x4a2   :  { %914 = vmatprep.subr.mxu1 %v1941_v1 }
 0x4a3   :  { %915 = vmatpush1.msra.mxu1 %v2069_v15 }
 0x4a4   :  { %916 = vmatprep.subr.mxu1 %v1941_v1 }
 0x4a5   :  { %917 = vmatpush1.msra.mxu1 %v2076_v16 }
 0x4a6   :  { %918 = vmatprep.subr.mxu1 %v1941_v1 }
 0x4a7   :  { %919 = vmatpush1.msra.mxu1 %v2083_v17 }
 0x4a8   :  { %920 = vmatprep.subr.mxu1 %v1941_v1 }
 0x4a9   :  { %921 = vmatpush1.msra.mxu1 %v2090_v18 }
 0x4aa   :  { %922 = vmatprep.subr.mxu1 %v1941_v1 }
 0x4ab   :  { %923 = vmatpush1.msra.mxu1 %v2097_v19 }
 0x4ac   :  { %924 = vmatprep.subr.mxu1 %v1941_v1 }
 0x4ad   :  { %925 = vmatpush1.msra.mxu1 %v2104_v20 }
 0x4ae   :  { %954 = vmatprep.subr.mxu1 %v1941_v1 }
 0x4af   :  { %955 = vmatpush2.msra.mxu1 %v2111_v21 }
 0x4b0   :  { %956 = vmatprep.subr.mxu1 %v1941_v1 }
 0x4b1   :  { %957 = vmatpush2.msra.mxu1 %v2118_v22 }
 0x4b2   :  { %959 = vmatmul.mubr.f32.vlgmr.msra.gmra.mxu1 %v1684_v35  ;;  %1844 = vmatprep.subr.mxu1 %v1941_v1  ;;  %v1918_v35 = vld [vmem:[%s2706_s1 + $0x60] sm:$0xff] }
 0x4b3   :  { %1852 = vmatprep.mubr.msk.f32.mxu1 %vm1942_vm1, %v1941_v1  ;;  %1845 = vmatpush3.msra.mxu1 %v1697_v54 }
 0x4b4   :  { %1846 = vmatprep.subr.mxu1 %v1941_v1 }
 0x4b5   :  { %1847 = vmatpush3.msra.mxu1 %v1696_v55 }
 0x4b6   :  { %1848 = vmatprep.subr.mxu1 %v1941_v1 }
 0x4b7   :  { %1849 = vmatpush3.msra.mxu1 %v1695_v56 }
 0x4b8   :  { %1850 = vmatprep.subr.mxu1 %v1941_v1 }
 0x4b9   :  { %1851 = vmatpush3.msra.mxu1 %v1694_v57 }
 0x4ba   :  { %1222 = vmatprep.subr.mxu1 %v1941_v1 }
 0x54e   :  { %v875_v45 = vpop.f32.mrf.mxu1 }
 0x54f   :  { %v879_v46 = vadd.f32 %v875_v45, %v715_v33  ;;  %v1916_v33 = vld [vmem:[%s2706_s1 + $0x70] sm:$0xff] }
 0x550   :  { %v1832_v47 = vpop.f32.mrf.mxu1  ;;  %v1539_v45 = vld [vmem:[%s2710_s5 + $0x10] sm:$0xff] }
 0x551   :  { %v1537_v47 = vld [vmem:[%s2710_s5] sm:$0xff] }
 0x572   :  { %v960_v49 = vpop.f32.mrf.mxu1 }
 0x573   :  { %v961_v50 = vadd.f32 %v2139_v25, %v960_v49 }
 0x574   :  { %v962_v51 = vpop.f32.mrf.mxu1 }
 0x575   :  { %v964_v53 = vmax.f32 %v961_v50, 0.0 }
 0x577   :  { %1842 = vmatmul.mubr.msk.f32.vlgmr.msra.gmra.mxu0 %vm149_vm2, %v964_v53 }
 0x578   :  { %1059 = vmatpush1.msra.mxu0 %v1987_v0  ;;  %1693 = vmatprep.mubr.msk.f32.mxu0 %vm71_vm0, %v1054_v52  ;;  %v1715_v52 = vld [vmem:[%s2711_s6] ss:$0 sm:$0xff] }
 0x579   :  { %1060 = vmatprep.subr.mxu0 %v1941_v1 }
 0x57a   :  { %1061 = vmatpush1.msra.mxu0 %v1993_v2 }
 0x57b   :  { %1062 = vmatprep.subr.mxu0 %v1941_v1 }
 0x57c   :  { %1063 = vmatpush1.msra.mxu0 %v2001_v3 }
 0x57d   :  { %1064 = vmatprep.subr.mxu0 %v1941_v1 }
 0x57e   :  { %1065 = vmatpush1.msra.mxu0 %v2008_v4 }
 0x57f   :  { %1066 = vmatprep.subr.mxu0 %v1941_v1 }
 0x580   :  { %1067 = vmatpush1.msra.mxu0 %v2021_v7 }
 0x581   :  { %1068 = vmatprep.subr.mxu0 %v1941_v1 }
 0x582   :  { %1069 = vmatpush1.msra.mxu0 %v2032_v10 }
 0x583   :  { %1070 = vmatprep.subr.mxu0 %v1941_v1 }
 0x584   :  { %1071 = vmatpush1.msra.mxu0 %v2040_v11 }
 0x585   :  { %1072 = vmatprep.subr.mxu0 %v1941_v1 }
 0x586   :  { %1073 = vmatpush1.msra.mxu0 %v2048_v12 }
 0x587   :  { %1074 = vmatprep.subr.mxu0 %v1941_v1 }
 0x588   :  { %1075 = vmatpush1.msra.mxu0 %v2055_v13 }
 0x589   :  { %1076 = vmatprep.subr.mxu0 %v1941_v1 }
 0x58a   :  { %1077 = vmatpush1.msra.mxu0 %v2062_v14 }
 0x58b   :  { %1078 = vmatprep.subr.mxu0 %v1941_v1 }
 0x58c   :  { %1079 = vmatpush1.msra.mxu0 %v2069_v15 }
 0x58d   :  { %1080 = vmatprep.subr.mxu0 %v1941_v1 }
 0x58e   :  { %1081 = vmatpush1.msra.mxu0 %v2076_v16 }
 0x58f   :  { %1082 = vmatprep.subr.mxu0 %v1941_v1 }
 0x590   :  { %1083 = vmatpush1.msra.mxu0 %v2083_v17 }
 0x591   :  { %1084 = vmatprep.subr.mxu0 %v1941_v1 }
 0x592   :  { %1085 = vmatpush1.msra.mxu0 %v2090_v18 }
 0x593   :  { %1086 = vmatprep.subr.mxu0 %v1941_v1 }
 0x594   :  { %1087 = vmatpush1.msra.mxu0 %v2097_v19 }
 0x595   :  { %1088 = vmatprep.subr.mxu0 %v1941_v1 }
 0x596   :  { %1089 = vmatpush1.msra.mxu0 %v2104_v20 }
 0x597   :  { %1118 = vmatprep.subr.mxu0 %v1941_v1 }
 0x598   :  { %1119 = vmatpush2.msra.mxu0 %v2111_v21 }
 0x599   :  { %1120 = vmatprep.subr.mxu0 %v1941_v1 }
 0x59a   :  { %1121 = vmatpush2.msra.mxu0 %v2118_v22 }
 0x59b   :  { %1123 = vmatmul.mubr.f32.vlgmr.msra.gmra.mxu0 %v1692_v48  ;;  %1855 = vmatprep.subr.mxu0 %v1941_v1 }
 0x59c   :  { %1863 = vmatprep.mubr.msk.f32.mxu0 %vm1942_vm1, %v1941_v1 }
 0x637   :  { %v1039_v58 = vpop.f32.mrf.mxu0 }
 0x638   :  { %v1043_v59 = vadd.f32 %v1039_v58, %v879_v46  ;;  %v1538_v46 = vld [vmem:[%s2710_s5 + $0x8] sm:$0xff] }
 0x639   :  { %v1843_v60 = vpop.f32.mrf.mxu0 }
 0x65b   :  { %v1124_v62 = vpop.f32.mrf.mxu0 }
 0x65c   :  { %v1125_v63 = vadd.f32 %v2139_v25, %v1124_v62 }
 0x65d   :  { %v1126_v5 = vpop.f32.mrf.mxu0 }
 0x65e   :  { %v1128_v8 = vmax.f32 %v1125_v63, 0.0 }
 0x660   :  { %1853 = vmatmul.mubr.msk.f32.vlgmr.msra.gmra.mxu1 %vm149_vm2, %v1128_v8 }
 0x661   :  { %1223 = vmatpush1.msra.mxu1 %v1987_v0  ;;  %1701 = vmatprep.mubr.msk.f32.mxu1 %vm71_vm0, %v1218_v6  ;;  %v1705_v0 = vld [vmem:[%s2708_s3 + $0xf8] sm:$0xff] }
 0x662   :  { %1224 = vmatprep.subr.mxu1 %v1941_v1  ;;  %1856 = vmatpush3.msra.mxu0 %v1705_v0 }
 0x663   :  { %1225 = vmatpush1.msra.mxu1 %v1993_v2  ;;  %v1704_v2 = vld [vmem:[%s2708_s3 + $0xf0] sm:$0xff]  ;;  %1857 = vmatprep.subr.mxu0 %v1941_v1 }
 0x664   :  { %1226 = vmatprep.subr.mxu1 %v1941_v1  ;;  %1858 = vmatpush3.msra.mxu0 %v1704_v2 }
 0x665   :  { %1227 = vmatpush1.msra.mxu1 %v2001_v3  ;;  %1859 = vmatprep.subr.mxu0 %v1941_v1  ;;  %v1703_v3 = vld [vmem:[%s2708_s3 + $0xe8] sm:$0xff] }
 0x666   :  { %1228 = vmatprep.subr.mxu1 %v1941_v1  ;;  %1860 = vmatpush3.msra.mxu0 %v1703_v3 }
 0x667   :  { %1229 = vmatpush1.msra.mxu1 %v2008_v4  ;;  %1861 = vmatprep.subr.mxu0 %v1941_v1  ;;  %v1702_v4 = vld [vmem:[%s2708_s3 + $0xe0] sm:$0xff] }
 0x668   :  { %1230 = vmatprep.subr.mxu1 %v1941_v1  ;;  %1862 = vmatpush3.msra.mxu0 %v1702_v4 }
 0x669   :  { %1231 = vmatpush1.msra.mxu1 %v2021_v7  ;;  %1386 = vmatprep.subr.mxu0 %v1941_v1 }
 0x66a   :  { %1232 = vmatprep.subr.mxu1 %v1941_v1 }
 0x66b   :  { %1233 = vmatpush1.msra.mxu1 %v2032_v10 }
 0x66c   :  { %1234 = vmatprep.subr.mxu1 %v1941_v1 }
 0x66d   :  { %1235 = vmatpush1.msra.mxu1 %v2040_v11 }
 0x66e   :  { %1236 = vmatprep.subr.mxu1 %v1941_v1 }
 0x66f   :  { %1237 = vmatpush1.msra.mxu1 %v2048_v12 }
 0x670   :  { %1238 = vmatprep.subr.mxu1 %v1941_v1 }
 0x671   :  { %1239 = vmatpush1.msra.mxu1 %v2055_v13 }
 0x672   :  { %1240 = vmatprep.subr.mxu1 %v1941_v1 }
 0x673   :  { %1241 = vmatpush1.msra.mxu1 %v2062_v14 }
 0x674   :  { %1242 = vmatprep.subr.mxu1 %v1941_v1 }
 0x675   :  { %1243 = vmatpush1.msra.mxu1 %v2069_v15 }
 0x676   :  { %1244 = vmatprep.subr.mxu1 %v1941_v1 }
 0x677   :  { %1245 = vmatpush1.msra.mxu1 %v2076_v16 }
 0x678   :  { %1246 = vmatprep.subr.mxu1 %v1941_v1 }
 0x679   :  { %1247 = vmatpush1.msra.mxu1 %v2083_v17 }
 0x67a   :  { %1248 = vmatprep.subr.mxu1 %v1941_v1 }
 0x67b   :  { %1249 = vmatpush1.msra.mxu1 %v2090_v18 }
 0x67c   :  { %1250 = vmatprep.subr.mxu1 %v1941_v1 }
 0x67d   :  { %1251 = vmatpush1.msra.mxu1 %v2097_v19 }
 0x67e   :  { %1252 = vmatprep.subr.mxu1 %v1941_v1 }
 0x67f   :  { %1253 = vmatpush1.msra.mxu1 %v2104_v20 }
 0x680   :  { %1282 = vmatprep.subr.mxu1 %v1941_v1 }
 0x681   :  { %1283 = vmatpush2.msra.mxu1 %v2111_v21 }
 0x682   :  { %1284 = vmatprep.subr.mxu1 %v1941_v1 }
 0x683   :  { %1285 = vmatpush2.msra.mxu1 %v2118_v22 }
 0x684   :  { %1287 = vmatmul.mubr.f32.vlgmr.msra.gmra.mxu1 %v1700_v61  ;;  %1866 = vmatprep.subr.mxu1 %v1941_v1 }
 0x685   :  { %1874 = vmatprep.mubr.msk.f32.mxu1 %vm1942_vm1, %v1941_v1 }
 0x720   :  { %v1203_v9 = vpop.f32.mrf.mxu1 }
 0x721   :  { %v2564_v23 = vadd.f32 %v1203_v9, %v1043_v59 }
 0x722   :  { %v1854_v24 = vpop.f32.mrf.mxu1 }
 0x744   :  { %v1288_v27 = vpop.f32.mrf.mxu1 }
 0x745   :  { %v1289_v28 = vadd.f32 %v2139_v25, %v1288_v27 }
 0x746   :  { %v1290_v29 = vpop.f32.mrf.mxu1 }
 0x747   :  { %v1292_v31 = vmax.f32 %v1289_v28, 0.0 }
 0x749   :  { %1864 = vmatmul.mubr.msk.f32.vlgmr.msra.gmra.mxu0 %vm149_vm2, %v1292_v31 }
 0x74a   :  { %1387 = vmatpush1.msra.mxu0 %v1915_v32  ;;  %1709 = vmatprep.mubr.msk.f32.mxu0 %vm71_vm0, %v1382_v30 }
 0x74b   :  { %1388 = vmatprep.subr.mxu0 %v1941_v1 }
 0x74c   :  { %1389 = vmatpush1.msra.mxu0 %v1916_v33 }
 0x74d   :  { %1390 = vmatprep.subr.mxu0 %v1941_v1 }
 0x74e   :  { %1391 = vmatpush1.msra.mxu0 %v1917_v34 }
 0x74f   :  { %1392 = vmatprep.subr.mxu0 %v1941_v1 }
 0x750   :  { %1393 = vmatpush1.msra.mxu0 %v1918_v35 }
 0x751   :  { %1394 = vmatprep.subr.mxu0 %v1941_v1 }
 0x752   :  { %1395 = vmatpush1.msra.mxu0 %v2021_v7  ;;  %v1713_v7 = vld [vmem:[%s2708_s3 + $0x118] sm:$0xff] }
 0x753   :  { %1396 = vmatprep.subr.mxu0 %v1941_v1  ;;  %1867 = vmatpush3.msra.mxu1 %v1713_v7 }
 0x754   :  { %1397 = vmatpush1.msra.mxu0 %v2032_v10  ;;  %1868 = vmatprep.subr.mxu1 %v1941_v1  ;;  %v1712_v10 = vld [vmem:[%s2708_s3 + $0x110] sm:$0xff] }
 0x755   :  { %1398 = vmatprep.subr.mxu0 %v1941_v1  ;;  %1869 = vmatpush3.msra.mxu1 %v1712_v10 }
 0x756   :  { %1399 = vmatpush1.msra.mxu0 %v2040_v11  ;;  %1870 = vmatprep.subr.mxu1 %v1941_v1  ;;  %v1711_v11 = vld [vmem:[%s2708_s3 + $0x108] sm:$0xff] }
 0x757   :  { %1400 = vmatprep.subr.mxu0 %v1941_v1  ;;  %1871 = vmatpush3.msra.mxu1 %v1711_v11 }
 0x758   :  { %1401 = vmatpush1.msra.mxu0 %v2048_v12  ;;  %1872 = vmatprep.subr.mxu1 %v1941_v1  ;;  %v1710_v12 = vld [vmem:[%s2708_s3 + $0x100] sm:$0xff] }
 0x759   :  { %1402 = vmatprep.subr.mxu0 %v1941_v1  ;;  %1873 = vmatpush3.msra.mxu1 %v1710_v12 }
 0x75a   :  { %1403 = vmatpush1.msra.mxu0 %v2055_v13  ;;  %1877 = vmatprep.subr.mxu1 %v1941_v1 }
 0x75b   :  { %1404 = vmatprep.subr.mxu0 %v1941_v1 }
 0x75c   :  { %1405 = vmatpush1.msra.mxu0 %v2062_v14 }
 0x75d   :  { %1406 = vmatprep.subr.mxu0 %v1941_v1 }
 0x75e   :  { %1407 = vmatpush1.msra.mxu0 %v2069_v15 }
 0x75f   :  { %1408 = vmatprep.subr.mxu0 %v1941_v1 }
 0x760   :  { %1409 = vmatpush1.msra.mxu0 %v2076_v16 }
 0x761   :  { %1410 = vmatprep.subr.mxu0 %v1941_v1 }
 0x762   :  { %1411 = vmatpush1.msra.mxu0 %v2083_v17 }
 0x763   :  { %1412 = vmatprep.subr.mxu0 %v1941_v1 }
 0x764   :  { %1413 = vmatpush1.msra.mxu0 %v2090_v18 }
 0x765   :  { %1414 = vmatprep.subr.mxu0 %v1941_v1 }
 0x766   :  { %1415 = vmatpush1.msra.mxu0 %v2097_v19 }
 0x767   :  { %1416 = vmatprep.subr.mxu0 %v1941_v1 }
 0x768   :  { %1417 = vmatpush1.msra.mxu0 %v2104_v20  ;;  %v1552_v20 = vld [vmem:[%s2710_s5 + $0x78] sm:$0xff] }
 0x769   :  { %1446 = vmatprep.subr.mxu0 %v1941_v1 }
 0x76a   :  { %1447 = vmatpush2.msra.mxu0 %v2111_v21  ;;  %v1551_v21 = vld [vmem:[%s2710_s5 + $0x70] sm:$0xff] }
 0x76b   :  { %1448 = vmatprep.subr.mxu0 %v1941_v1 }
 0x76c   :  { %1449 = vmatpush2.msra.mxu0 %v2118_v22  ;;  %v1550_v22 = vld [vmem:[%s2710_s5 + $0x68] sm:$0xff] }
 0x76d   :  { %1451 = vmatmul.mubr.f32.vlgmr.msra.gmra.mxu0 %v1708_v26 }
 0x809   :  { %v1367_v13 = vpop.f32.mrf.mxu0 }
 0x80a   :  { %v1371_v14 = vadd.f32 %v1367_v13, %v2564_v23 }
 0x80b   :  { %v1865_v15 = vpop.f32.mrf.mxu0 }
 0x82d   :  { %v1452_v16 = vpop.f32.mrf.mxu0 }
 0x82e   :  { %v1453_v17 = vadd.f32 %v2139_v25, %v1452_v16  ;;  %v1549_v25 = vld [vmem:[%s2710_s5 + $0x60] sm:$0xff] }
 0x82f   :  { %v1454_v18 = vpop.f32.mrf.mxu0 }
 0x830   :  { %v1456_v19 = vmax.f32 %v1453_v17, 0.0 }
 0x832   :  { %1875 = vmatmul.mubr.msk.f32.vlgmr.msra.gmra.mxu1 %vm149_vm2, %v1456_v19 }
 0x833   :  { %1878 = vmatpush3.msra.mxu1 %v1552_v20  ;;  %1909 = vmatprep.mubr.msk.f32.mxu1 %vm1942_vm1, %v1941_v1 }
 0x834   :  { %1879 = vmatprep.subr.mxu1 %v1941_v1 }
 0x835   :  { %1880 = vmatpush3.msra.mxu1 %v1551_v21 }
 0x836   :  { %1881 = vmatprep.subr.mxu1 %v1941_v1 }
 0x837   :  { %1882 = vmatpush3.msra.mxu1 %v1550_v22 }
 0x838   :  { %1883 = vmatprep.subr.mxu1 %v1941_v1 }
 0x839   :  { %1884 = vmatpush3.msra.mxu1 %v1549_v25 }
 0x83a   :  { %1885 = vmatprep.subr.mxu1 %v1941_v1 }
 0x83b   :  { %1886 = vmatpush3.msra.mxu1 %v1548_v36 }
 0x83c   :  { %1887 = vmatprep.subr.mxu1 %v1941_v1 }
 0x83d   :  { %1888 = vmatpush3.msra.mxu1 %v1547_v37 }
 0x83e   :  { %1889 = vmatprep.subr.mxu1 %v1941_v1 }
 0x83f   :  { %1890 = vmatpush3.msra.mxu1 %v1546_v38 }
 0x840   :  { %1891 = vmatprep.subr.mxu1 %v1941_v1 }
 0x841   :  { %1892 = vmatpush3.msra.mxu1 %v1545_v39 }
 0x842   :  { %1893 = vmatprep.subr.mxu1 %v1941_v1 }
 0x843   :  { %1894 = vmatpush3.msra.mxu1 %v1544_v40 }
 0x844   :  { %1895 = vmatprep.subr.mxu1 %v1941_v1 }
 0x845   :  { %1896 = vmatpush3.msra.mxu1 %v1543_v41 }
 0x846   :  { %1897 = vmatprep.subr.mxu1 %v1941_v1 }
 0x847   :  { %1898 = vmatpush3.msra.mxu1 %v1542_v42 }
 0x848   :  { %1899 = vmatprep.subr.mxu1 %v1941_v1 }
 0x849   :  { %1900 = vmatpush3.msra.mxu1 %v1541_v43 }
 0x84a   :  { %1901 = vmatprep.subr.mxu1 %v1941_v1 }
 0x84b   :  { %1902 = vmatpush3.msra.mxu1 %v1540_v44 }
 0x84c   :  { %1903 = vmatprep.subr.mxu1 %v1941_v1 }
 0x84d   :  { %1904 = vmatpush3.msra.mxu1 %v1539_v45 }
 0x84e   :  { %1905 = vmatprep.subr.mxu1 %v1941_v1 }
 0x84f   :  { %1906 = vmatpush3.msra.mxu1 %v1538_v46 }
 0x850   :  { %1907 = vmatprep.subr.mxu1 %v1941_v1 }
 0x851   :  { %1908 = vmatpush3.msra.mxu1 %v1537_v47 }
 0x8f2   :  { %v1531_v48 = vpop.f32.mrf.mxu1 }
 0x8f3   :  { %v1535_v49 = vadd.f32 %v1531_v48, %v1371_v14 }
 0x8f4   :  { %v1876_v50 = vpop.f32.mrf.mxu1 }
 0x8f5   :  { %v1536_v51 = vmax.f32 %v1535_v49, 0.0 }
 0x8f7   :  { %1910 = vmatmul.mubr.f32.vlgmr.msra.gmra.mxu1 %v1536_v51 }
 0x9b7   :  { %v1626_v53 = vpop.f32.mrf.mxu1 }
 0x9b8   :  { %v1627_v54 = vadd.f32 %v1715_v52, %v1626_v53 }
 0x9b9   :  { %v1911_v1 = vpop.f32.mrf.mxu1 }
 0x9ba   :  { %1631 = vst.msk [vmem:[#allocation2] sm:$0x3] %vm1630_vm3, %v1627_v54 }
 0x9bb   :  { %1930 = shalt.err (!%p1927_p4)
}
 0x9bc   :  { %1641 = dma.vmem_to_hbm [thread:$0]  %s1639_s21, 32, %s2712_s7, [#allocation3]  }
 0x9bd   :  { %1939 = dma.done.wait [#allocation3], 32  }
 0x9be   :  { %1940 = vsyncadd [#allocation3], 4294967264 }
 0x9bf   :  { %1645 = vsyncpa [#allocation3], 1 }

</bundles_post_ra>
